<compile_context>
chip_gen: v7x
topology: tpu7x:2x2x1
jax: 0.10.0
libtpu: 0.0.40
codegen_flags: <defaults>
</compile_context>

<pallas_src>
import functools

import jax
import jax.numpy as jnp
from jax import lax
from jax.experimental import pallas as pl
from jax.experimental.pallas import tpu as pltpu


H_PAD = 128      # hidden dim padded to one full lane tile (attention columns packed inside it)
OUT_PAD = 128    # final-linear output padded to a full lane width (lane-dense store)


def mygat_kernel(num_layers, hidden,
                 x_ref, negmask_ref, pool_ref,
                 w_init_ref, b_init_ref,
                 w_aug_ref, b_gat_ref,
                 w_fin_ref, b_fin_ref,
                 out_ref):
    f32 = jnp.float32
    bf16 = jnp.bfloat16
    n = x_ref.shape[0]                # nodes per graph-batch

    # ---- initial Linear (bf16 operands, f32 accumulation) -------------------------------
    h = jnp.dot(x_ref[...], w_init_ref[...], preferred_element_type=f32) + b_init_ref[...]

    # additive edge mask precomputed on the host (edges -> 0, non-edges -> -1e30); one cast
    neg_mask = negmask_ref[...].astype(f32)

    ones_col = jnp.ones((n, 1), bf16)
    dn = (((1,), (1,)), ((), ()))     # contract last dims (q @ k^T pattern)

    # ---- GAT stack (heads=1); ReLU between layers, none after the last ------------------
    for l in range(num_layers):
        # one augmented projection per layer, a SINGLE 128-lane output tile:
        #   z[:, :hidden]  = h @ W
        #   z[:, hidden]   = h @ W @ a_src^T     (alpha_src)
        #   z[:, hidden+1] = h @ W @ a_dst^T     (alpha_dst)
        # Stray alpha lanes are harmless downstream: rows >= hidden of every w_aug / w_fin
        # are zero (see prepare_params), so they never feed back into the real features.
        z = jnp.dot(h.astype(bf16), w_aug_ref[l], preferred_element_type=f32)    # [N, H_PAD]
        a_s_col = z[:, hidden:hidden + 1].astype(bf16)                            # [N, 1]
        a_d_col = z[:, hidden + 1:hidden + 2].astype(bf16)                        # [N, 1]

        # e[i, j] = alpha_dst[i] + alpha_src[j] via ONE bf16 K=2 MXU pass:
        # [1, a_dst] contracted with [a_src, 1] does the relayout and the broadcast-add.
        lhs = jnp.concatenate([ones_col, a_d_col], axis=-1)                       # [N, 2]
        rhs = jnp.concatenate([a_s_col, ones_col], axis=-1)                       # [N, 2]
        e = lax.dot_general(lhs, rhs, dn, preferred_element_type=f32)             # [N, N]
        e = jnp.maximum(e, 0.2 * e) + neg_mask           # LeakyReLU(0.2) + additive mask

        # edge softmax over incoming edges (per destination row), f32
        m = jnp.max(e, axis=-1, keepdims=True)
        p = jnp.exp(e - m)                               # masked entries -> exact 0
        # approx reciprocal on the otherwise-idle EUP slot: rows sum to 1 +- ~2^-12, which is
        # the sole reason for the 5e-2 test tolerance -- do not tighten it.
        inv = pl.reciprocal(jnp.sum(p, axis=-1, keepdims=True), approx=True)
        attn = p * inv

        h_new = jnp.dot(attn.astype(bf16), z.astype(bf16),
                        preferred_element_type=f32) + b_gat_ref[l]
        h = jnp.maximum(h_new, 0.0) if l < num_layers - 1 else h_new

    # ---- global_add_pool via one-hot(batch) matmul, then final Linear (lane-dense) ------
    pooled = jnp.dot(pool_ref[...], h.astype(bf16), preferred_element_type=f32)   # [G, H_PAD]
    out_ref[...] = (jnp.dot(pooled.astype(bf16), w_fin_ref[...],
                            preferred_element_type=f32) + b_fin_ref[...])         # [G, OUT_PAD]


def prepare_params(params, h_pad=H_PAD, out_pad=OUT_PAD):
    """Pad hidden/out dims to a full lane width, fold attention vectors into the projection,
    cast MXU weights to bf16.

    Invariant (relied upon by the kernel): rows >= hidden of w_aug and w_fin are ZERO, so the
    alpha values living in lanes `hidden`/`hidden+1` of the node-feature matrix never leak
    into the real feature columns or the final output."""
    f32, bf16 = jnp.float32, jnp.bfloat16
    f_in, h = params["w_init"].shape
    n_layers = params["w_gat"].shape[0]
    c_out = params["w_fin"].shape[1]
    assert h + 2 <= h_pad, "attention columns must fit inside the padded lane tile"

    w_init = jnp.zeros((f_in, h_pad), f32).at[:, :h].set(params["w_init"])
    b_init = jnp.zeros((1, h_pad), f32).at[:, :h].set(params["b_init"])

    w_aug_layers = []
    for l in range(n_layers):
        w_aug_l = jnp.zeros((h_pad, h_pad), f32)
        w_aug_l = w_aug_l.at[:h, :h].set(params["w_gat"][l])
        w_aug_l = w_aug_l.at[:h, h].set((params["w_gat"][l] @ params["a_src"][l].T)[:, 0])
        w_aug_l = w_aug_l.at[:h, h + 1].set((params["w_gat"][l] @ params["a_dst"][l].T)[:, 0])
        w_aug_layers.append(w_aug_l)
    w_aug = jnp.stack(w_aug_layers, axis=0).astype(bf16)          # [L, h_pad, h_pad]

    b_gat = jnp.zeros((n_layers, 1, h_pad), f32).at[:, :, :h].set(params["b_gat"])
    w_fin = jnp.zeros((h_pad, out_pad), f32).at[:h, :c_out].set(params["w_fin"]).astype(bf16)
    b_fin = jnp.zeros((1, out_pad), f32).at[:, :c_out].set(params["b_fin"])

    return {"w_init": w_init.astype(bf16), "b_init": b_init,
            "w_aug": w_aug, "b_gat": b_gat,
            "w_fin": w_fin, "b_fin": b_fin}


def mygat_forward(x_bf, negmask_bf, pool_bf, prep, num_layers, hidden):
    """x_bf: [B, N, F_IN], negmask_bf: [B, N, N] additive mask (0 / -1e30) in bf16,
    pool_bf: [B, G, N] one-hot pooling matrices.  One grid step per graph-batch."""
    b, n, f_in = x_bf.shape
    g = pool_bf.shape[1]
    out_pad = prep["w_fin"].shape[1]
    kernel = functools.partial(mygat_kernel, num_layers, hidden)

    def resident(shape):
        # weights: same block every grid step -> stay VMEM-resident (no per-step re-DMA)
        return pl.BlockSpec(shape, lambda i: (0,) * len(shape))

    return pl.pallas_call(
        kernel,
        out_shape=jax.ShapeDtypeStruct((b, g, out_pad), jnp.float32),
        grid=(b,),
        in_specs=[
            pl.BlockSpec((None, n, f_in), lambda i: (i, 0, 0)),    # x       (per batch)
            pl.BlockSpec((None, n, n), lambda i: (i, 0, 0)),       # mask    (per batch)
            pl.BlockSpec((None, g, n), lambda i: (i, 0, 0)),       # pool    (per batch)
            resident(prep["w_init"].shape),
            resident(prep["b_init"].shape),
            resident(prep["w_aug"].shape),
            resident(prep["b_gat"].shape),
            resident(prep["w_fin"].shape),
            resident(prep["b_fin"].shape),
        ],
        out_specs=pl.BlockSpec((None, g, out_pad), lambda i: (i, 0, 0)),
        compiler_params=pltpu.CompilerParams(
            dimension_semantics=("parallel",),          # megacore-shardable on v7x
            vmem_limit_bytes=8 * 1024 * 1024),          # footprint << 1 MiB; don't grab 64 MiB
    )(x_bf, negmask_bf, pool_bf,
      prep["w_init"], prep["b_init"],
      prep["w_aug"], prep["b_gat"],
      prep["w_fin"], prep["b_fin"])


def mygat_reference(x_bf, negmask_bf, pool_bf, prep, num_layers, hidden):
    """Pure-JAX reference mirroring the kernel's precision (bf16 operands, f32 accumulation,
    bf16-rounded alpha scalars), except it uses an exact division for the softmax."""
    f32, bf16 = jnp.float32, jnp.bfloat16

    def one(xb, mb, pb):
        h = jnp.dot(xb, prep["w_init"], preferred_element_type=f32) + prep["b_init"]
        neg = mb.astype(f32)
        for l in range(num_layers):
            z = jnp.dot(h.astype(bf16), prep["w_aug"][l], preferred_element_type=f32)
            a_s = z[:, hidden].astype(bf16).astype(f32)
            a_d = z[:, hidden + 1].astype(bf16).astype(f32)
            e = a_d[:, None] + a_s[None, :]
            e = jnp.maximum(e, 0.2 * e) + neg
            p = jnp.exp(e - jnp.max(e, axis=-1, keepdims=True))
            attn = p / jnp.sum(p, axis=-1, keepdims=True)
            h_new = jnp.dot(attn.astype(bf16), z.astype(bf16),
                            preferred_element_type=f32) + prep["b_gat"][l]
            h = jnp.maximum(h_new, 0.0) if l < num_layers - 1 else h_new
        pooled = jnp.dot(pb, h.astype(bf16), preferred_element_type=f32)
        return jnp.dot(pooled.astype(bf16), prep["w_fin"], preferred_element_type=f32) + prep["b_fin"]

    return jnp.stack([one(x_bf[i], negmask_bf[i], pool_bf[i]) for i in range(x_bf.shape[0])])


def glorot(key, shape):
    fan_in, fan_out = shape[-2], shape[-1]
    limit = (6.0 / (fan_in + fan_out)) ** 0.5
    return jax.random.uniform(key, shape, jnp.float32, -limit, limit)


if __name__ == "__main__":
    # small shapes: 2 graph-batches, each with 4 graphs of 8 nodes (N=32 rows per kernel step),
    # in=8, hidden=32, out=4, 3 GAT layers
    B, G_PER, NPG = 2, 4, 8
    N = G_PER * NPG
    F_IN, H, C_OUT, L = 8, 32, 4, 3

    key = jax.random.PRNGKey(0)
    keys = jax.random.split(key, 12)

    # node features per graph-batch
    x = jax.random.normal(keys[0], (B, N, F_IN), jnp.float32)

    # deterministic graph structure: bidirectional ring inside each graph + self-loops
    # (GATConv default; self-loops are a precondition so every softmax row is non-empty)
    src, dst = [], []
    for g in range(G_PER):
        off = g * NPG
        for i in range(NPG):
            j = (i + 1) % NPG
            src += [off + i, off + j]
            dst += [off + j, off + i]
    adj = jnp.zeros((N, N), jnp.float32)
    adj = adj.at[jnp.array(dst), jnp.array(src)].set(1.0)     # adj[dst, src] = 1
    adj = adj.at[jnp.arange(N), jnp.arange(N)].set(1.0)       # self-loops

    # additive mask precomputed on the host (bf16: -1e30 is representable)
    negmask = jnp.where(adj > 0, 0.0, -1e30).astype(jnp.bfloat16)
    negmask_b = jnp.tile(negmask[None], (B, 1, 1))

    # batch vector -> one-hot pooling matrix [G_PER, N], same layout for every graph-batch
    batch_vec = jnp.repeat(jnp.arange(G_PER), NPG)
    pool = (jnp.arange(G_PER)[:, None] == batch_vec[None, :]).astype(jnp.float32)
    pool_b = jnp.tile(pool[None], (B, 1, 1)).astype(jnp.bfloat16)

    params = {
        "w_init": glorot(keys[1], (F_IN, H)),
        "b_init": jax.random.uniform(keys[2], (1, H), jnp.float32, -0.1, 0.1),
        "w_gat":  glorot(keys[3], (L, H, H)),
        "a_src":  glorot(keys[4], (L, 1, H)),
        "a_dst":  glorot(keys[5], (L, 1, H)),
        "b_gat":  jnp.zeros((L, 1, H), jnp.float32),          # GATConv bias inits to zeros
        "w_fin":  glorot(keys[6], (H, C_OUT)),
        "b_fin":  jax.random.uniform(keys[7], (1, C_OUT), jnp.float32, -0.1, 0.1),
    }

    prep = prepare_params(params)
    x_bf = x.astype(jnp.bfloat16)

    out_padded = mygat_forward(x_bf, negmask_b, pool_b, prep, L, H)
    out_padded = jax.block_until_ready(out_padded)
    out = out_padded[:, :, :C_OUT]                            # [B, G_PER, C_OUT]

    ref = mygat_reference(x_bf, negmask_b, pool_b, prep, L, H)[:, :, :C_OUT]
    assert out.shape == (B, G_PER, C_OUT)
    # kernel and reference share all bf16 roundings; the only difference is the approximate
    # EUP reciprocal in the softmax, hence the modest tolerance.
    assert jnp.allclose(out, ref, atol=5e-2, rtol=5e-2), (out, ref)

    # TODO(synk): torch .squeeze() on the per-dataset [num_graphs, C_OUT] result is a no-op at
    # these sizes, so it stays as plain-JAX shape glue rather than in-kernel.
    print("KERNEL_OK")
</pallas_src>

<mosaic_0001>
module attributes {stable_mosaic.version = 11 : i64} {
  func.func @mygat_kernel(%arg0: i32, %arg1: memref<1x32x8xbf16, #tpu.memory_space<vmem>>, %arg2: memref<1x32x32xbf16, #tpu.memory_space<vmem>>, %arg3: memref<1x4x32xbf16, #tpu.memory_space<vmem>>, %arg4: memref<8x128xbf16, #tpu.memory_space<vmem>>, %arg5: memref<1x128xf32, #tpu.memory_space<vmem>>, %arg6: memref<3x128x128xbf16, #tpu.memory_space<vmem>>, %arg7: memref<3x1x128xf32, #tpu.memory_space<vmem>>, %arg8: memref<128x128xbf16, #tpu.memory_space<vmem>>, %arg9: memref<1x128xf32, #tpu.memory_space<vmem>>, %arg10: memref<1x4x128xf32, #tpu.memory_space<vmem>>) attributes {dimension_semantics = [#tpu.dimension_semantics<parallel>], iteration_bounds = array<i64: 2>, scalar_prefetch = 0 : i64, scratch_operands = 0 : i64, tpu.core_type = #tpu.core_type<tc>, window_params = [{transform_indices = @transform_0, window_bounds = array<i64: 1, 32, 8>}, {transform_indices = @transform_1, window_bounds = array<i64: 1, 32, 32>}, {transform_indices = @transform_2, window_bounds = array<i64: 1, 4, 32>}, {pipeline_mode = #tpu.pipeline_mode<synchronous>, transform_indices = @transform_3, window_bounds = array<i64: 8, 128>}, {pipeline_mode = #tpu.pipeline_mode<synchronous>, transform_indices = @transform_4, window_bounds = array<i64: 1, 128>}, {pipeline_mode = #tpu.pipeline_mode<synchronous>, transform_indices = @transform_5, window_bounds = array<i64: 3, 128, 128>}, {pipeline_mode = #tpu.pipeline_mode<synchronous>, transform_indices = @transform_6, window_bounds = array<i64: 3, 1, 128>}, {pipeline_mode = #tpu.pipeline_mode<synchronous>, transform_indices = @transform_7, window_bounds = array<i64: 128, 128>}, {pipeline_mode = #tpu.pipeline_mode<synchronous>, transform_indices = @transform_8, window_bounds = array<i64: 1, 128>}, {transform_indices = @transform_9, window_bounds = array<i64: 1, 4, 128>}]} {
    %c0 = arith.constant 0 : index
    %c0_0 = arith.constant 0 : index
    %c0_1 = arith.constant 0 : index
    %0 = vector.load %arg1[%c0, %c0_0, %c0_1] : memref<1x32x8xbf16, #tpu.memory_space<vmem>>, vector<1x32x8xbf16>
    %1 = vector.shape_cast %0 : vector<1x32x8xbf16> to vector<32x8xbf16>
    %c0_2 = arith.constant 0 : index
    %c0_3 = arith.constant 0 : index
    %2 = vector.load %arg4[%c0_2, %c0_3] : memref<8x128xbf16, #tpu.memory_space<vmem>>, vector<8x128xbf16>
    %cst = arith.constant dense<0.000000e+00> : vector<32x128xf32>
    %3 = tpu.matmul %1, %2, %cst {dimension_numbers = #tpu.dot_dimension_numbers<[1], [0], [0], [1], [0, 0, 1, 1], [], []>} : vector<32x8xbf16>, vector<8x128xbf16>, vector<32x128xf32> -> vector<32x128xf32>
    %c0_4 = arith.constant 0 : index
    %c0_5 = arith.constant 0 : index
    %4 = vector.load %arg5[%c0_4, %c0_5] : memref<1x128xf32, #tpu.memory_space<vmem>>, vector<1x128xf32>
    %5 = vector.broadcast %4 : vector<1x128xf32> to vector<32x128xf32>
    %6 = arith.addf %3, %5 : vector<32x128xf32>
    %c0_6 = arith.constant 0 : index
    %c0_7 = arith.constant 0 : index
    %c0_8 = arith.constant 0 : index
    %7 = vector.load %arg2[%c0_6, %c0_7, %c0_8] : memref<1x32x32xbf16, #tpu.memory_space<vmem>>, vector<1x32x32xbf16>
    %8 = vector.shape_cast %7 : vector<1x32x32xbf16> to vector<32x32xbf16>
    %9 = arith.extf %8 : vector<32x32xbf16> to vector<32x32xf32>
    %cst_9 = arith.constant 1.000000e+00 : bf16
    %10 = vector.broadcast %cst_9 : bf16 to vector<32x1xbf16>
    %11 = arith.truncf %6 : vector<32x128xf32> to vector<32x128xbf16>
    %c0_10 = arith.constant 0 : index
    %c0_11 = arith.constant 0 : index
    %c0_12 = arith.constant 0 : index
    %12 = vector.load %arg6[%c0_10, %c0_11, %c0_12] : memref<3x128x128xbf16, #tpu.memory_space<vmem>>, vector<1x128x128xbf16>
    %13 = vector.shape_cast %12 : vector<1x128x128xbf16> to vector<128x128xbf16>
    %cst_13 = arith.constant dense<0.000000e+00> : vector<32x128xf32>
    %14 = tpu.matmul %11, %13, %cst_13 {dimension_numbers = #tpu.dot_dimension_numbers<[1], [0], [0], [1], [0, 0, 1, 1], [], []>} : vector<32x128xbf16>, vector<128x128xbf16>, vector<32x128xf32> -> vector<32x128xf32>
    %15 = vector.extract_strided_slice %14 {offsets = [0, 32], sizes = [32, 1], strides = [1, 1]} : vector<32x128xf32> to vector<32x1xf32>
    %16 = arith.truncf %15 : vector<32x1xf32> to vector<32x1xbf16>
    %17 = vector.extract_strided_slice %14 {offsets = [0, 33], sizes = [32, 1], strides = [1, 1]} : vector<32x128xf32> to vector<32x1xf32>
    %18 = arith.truncf %17 : vector<32x1xf32> to vector<32x1xbf16>
    %19 = tpu.concatenate %10, %18 in 1 : vector<32x1xbf16>, vector<32x1xbf16> -> vector<32x2xbf16>
    %20 = tpu.concatenate %16, %10 in 1 : vector<32x1xbf16>, vector<32x1xbf16> -> vector<32x2xbf16>
    %cst_14 = arith.constant dense<0.000000e+00> : vector<32x32xf32>
    %21 = tpu.matmul %19, %20, %cst_14 {dimension_numbers = #tpu.dot_dimension_numbers<[1], [1], [0], [0], [0, 0, 1, 0], [], []>} : vector<32x2xbf16>, vector<32x2xbf16>, vector<32x32xf32> -> vector<32x32xf32>
    %cst_15 = arith.constant 2.000000e-01 : f32
    %22 = vector.broadcast %cst_15 : f32 to vector<32x32xf32>
    %23 = arith.mulf %22, %21 : vector<32x32xf32>
    %24 = arith.maximumf %21, %23 : vector<32x32xf32>
    %25 = arith.addf %24, %9 : vector<32x32xf32>
    %cst_16 = arith.constant dense<0xFF800000> : vector<32xf32>
    %26 = vector.multi_reduction <maximumf>, %25, %cst_16 [1] : vector<32x32xf32> to vector<32xf32>
    %27 = vector.shape_cast %26 : vector<32xf32> to vector<32x1xf32>
    %28 = vector.broadcast %27 : vector<32x1xf32> to vector<32x32xf32>
    %29 = arith.subf %25, %28 : vector<32x32xf32>
    %30 = math.exp %29 : vector<32x32xf32>
    %cst_17 = arith.constant dense<0.000000e+00> : vector<32xf32>
    %31 = vector.multi_reduction <add>, %30, %cst_17 [1] : vector<32x32xf32> to vector<32xf32>
    %32 = vector.shape_cast %31 : vector<32xf32> to vector<32x1xf32>
    %33 = tpu.reciprocal %32 {approx = true} : vector<32x1xf32> -> vector<32x1xf32>
    %34 = vector.broadcast %33 : vector<32x1xf32> to vector<32x32xf32>
    %35 = arith.mulf %30, %34 : vector<32x32xf32>
    %36 = arith.truncf %35 : vector<32x32xf32> to vector<32x32xbf16>
    %37 = arith.truncf %14 : vector<32x128xf32> to vector<32x128xbf16>
    %cst_18 = arith.constant dense<0.000000e+00> : vector<32x128xf32>
    %38 = tpu.matmul %36, %37, %cst_18 {dimension_numbers = #tpu.dot_dimension_numbers<[1], [0], [0], [1], [0, 0, 1, 1], [], []>} : vector<32x32xbf16>, vector<32x128xbf16>, vector<32x128xf32> -> vector<32x128xf32>
    %c0_19 = arith.constant 0 : index
    %c0_20 = arith.constant 0 : index
    %c0_21 = arith.constant 0 : index
    %39 = vector.load %arg7[%c0_19, %c0_20, %c0_21] : memref<3x1x128xf32, #tpu.memory_space<vmem>>, vector<1x1x128xf32>
    %40 = vector.shape_cast %39 : vector<1x1x128xf32> to vector<1x128xf32>
    %41 = vector.broadcast %40 : vector<1x128xf32> to vector<32x128xf32>
    %42 = arith.addf %38, %41 : vector<32x128xf32>
    %cst_22 = arith.constant 0.000000e+00 : f32
    %43 = vector.broadcast %cst_22 : f32 to vector<32x128xf32>
    %44 = arith.maximumf %42, %43 : vector<32x128xf32>
    %45 = arith.truncf %44 : vector<32x128xf32> to vector<32x128xbf16>
    %c1 = arith.constant 1 : index
    %c0_23 = arith.constant 0 : index
    %c0_24 = arith.constant 0 : index
    %46 = vector.load %arg6[%c1, %c0_23, %c0_24] : memref<3x128x128xbf16, #tpu.memory_space<vmem>>, vector<1x128x128xbf16>
    %47 = vector.shape_cast %46 : vector<1x128x128xbf16> to vector<128x128xbf16>
    %cst_25 = arith.constant dense<0.000000e+00> : vector<32x128xf32>
    %48 = tpu.matmul %45, %47, %cst_25 {dimension_numbers = #tpu.dot_dimension_numbers<[1], [0], [0], [1], [0, 0, 1, 1], [], []>} : vector<32x128xbf16>, vector<128x128xbf16>, vector<32x128xf32> -> vector<32x128xf32>
    %49 = vector.extract_strided_slice %48 {offsets = [0, 32], sizes = [32, 1], strides = [1, 1]} : vector<32x128xf32> to vector<32x1xf32>
    %50 = arith.truncf %49 : vector<32x1xf32> to vector<32x1xbf16>
    %51 = vector.extract_strided_slice %48 {offsets = [0, 33], sizes = [32, 1], strides = [1, 1]} : vector<32x128xf32> to vector<32x1xf32>
    %52 = arith.truncf %51 : vector<32x1xf32> to vector<32x1xbf16>
    %53 = tpu.concatenate %10, %52 in 1 : vector<32x1xbf16>, vector<32x1xbf16> -> vector<32x2xbf16>
    %54 = tpu.concatenate %50, %10 in 1 : vector<32x1xbf16>, vector<32x1xbf16> -> vector<32x2xbf16>
    %cst_26 = arith.constant dense<0.000000e+00> : vector<32x32xf32>
    %55 = tpu.matmul %53, %54, %cst_26 {dimension_numbers = #tpu.dot_dimension_numbers<[1], [1], [0], [0], [0, 0, 1, 0], [], []>} : vector<32x2xbf16>, vector<32x2xbf16>, vector<32x32xf32> -> vector<32x32xf32>
    %cst_27 = arith.constant 2.000000e-01 : f32
    %56 = vector.broadcast %cst_27 : f32 to vector<32x32xf32>
    %57 = arith.mulf %56, %55 : vector<32x32xf32>
    %58 = arith.maximumf %55, %57 : vector<32x32xf32>
    %59 = arith.addf %58, %9 : vector<32x32xf32>
    %cst_28 = arith.constant dense<0xFF800000> : vector<32xf32>
    %60 = vector.multi_reduction <maximumf>, %59, %cst_28 [1] : vector<32x32xf32> to vector<32xf32>
    %61 = vector.shape_cast %60 : vector<32xf32> to vector<32x1xf32>
    %62 = vector.broadcast %61 : vector<32x1xf32> to vector<32x32xf32>
    %63 = arith.subf %59, %62 : vector<32x32xf32>
    %64 = math.exp %63 : vector<32x32xf32>
    %cst_29 = arith.constant dense<0.000000e+00> : vector<32xf32>
    %65 = vector.multi_reduction <add>, %64, %cst_29 [1] : vector<32x32xf32> to vector<32xf32>
    %66 = vector.shape_cast %65 : vector<32xf32> to vector<32x1xf32>
    %67 = tpu.reciprocal %66 {approx = true} : vector<32x1xf32> -> vector<32x1xf32>
    %68 = vector.broadcast %67 : vector<32x1xf32> to vector<32x32xf32>
    %69 = arith.mulf %64, %68 : vector<32x32xf32>
    %70 = arith.truncf %69 : vector<32x32xf32> to vector<32x32xbf16>
    %71 = arith.truncf %48 : vector<32x128xf32> to vector<32x128xbf16>
    %cst_30 = arith.constant dense<0.000000e+00> : vector<32x128xf32>
    %72 = tpu.matmul %70, %71, %cst_30 {dimension_numbers = #tpu.dot_dimension_numbers<[1], [0], [0], [1], [0, 0, 1, 1], [], []>} : vector<32x32xbf16>, vector<32x128xbf16>, vector<32x128xf32> -> vector<32x128xf32>
    %c1_31 = arith.constant 1 : index
    %c0_32 = arith.constant 0 : index
    %c0_33 = arith.constant 0 : index
    %73 = vector.load %arg7[%c1_31, %c0_32, %c0_33] : memref<3x1x128xf32, #tpu.memory_space<vmem>>, vector<1x1x128xf32>
    %74 = vector.shape_cast %73 : vector<1x1x128xf32> to vector<1x128xf32>
    %75 = vector.broadcast %74 : vector<1x128xf32> to vector<32x128xf32>
    %76 = arith.addf %72, %75 : vector<32x128xf32>
    %cst_34 = arith.constant 0.000000e+00 : f32
    %77 = vector.broadcast %cst_34 : f32 to vector<32x128xf32>
    %78 = arith.maximumf %76, %77 : vector<32x128xf32>
    %79 = arith.truncf %78 : vector<32x128xf32> to vector<32x128xbf16>
    %c2 = arith.constant 2 : index
    %c0_35 = arith.constant 0 : index
    %c0_36 = arith.constant 0 : index
    %80 = vector.load %arg6[%c2, %c0_35, %c0_36] : memref<3x128x128xbf16, #tpu.memory_space<vmem>>, vector<1x128x128xbf16>
    %81 = vector.shape_cast %80 : vector<1x128x128xbf16> to vector<128x128xbf16>
    %cst_37 = arith.constant dense<0.000000e+00> : vector<32x128xf32>
    %82 = tpu.matmul %79, %81, %cst_37 {dimension_numbers = #tpu.dot_dimension_numbers<[1], [0], [0], [1], [0, 0, 1, 1], [], []>} : vector<32x128xbf16>, vector<128x128xbf16>, vector<32x128xf32> -> vector<32x128xf32>
    %83 = vector.extract_strided_slice %82 {offsets = [0, 32], sizes = [32, 1], strides = [1, 1]} : vector<32x128xf32> to vector<32x1xf32>
    %84 = arith.truncf %83 : vector<32x1xf32> to vector<32x1xbf16>
    %85 = vector.extract_strided_slice %82 {offsets = [0, 33], sizes = [32, 1], strides = [1, 1]} : vector<32x128xf32> to vector<32x1xf32>
    %86 = arith.truncf %85 : vector<32x1xf32> to vector<32x1xbf16>
    %87 = tpu.concatenate %10, %86 in 1 : vector<32x1xbf16>, vector<32x1xbf16> -> vector<32x2xbf16>
    %88 = tpu.concatenate %84, %10 in 1 : vector<32x1xbf16>, vector<32x1xbf16> -> vector<32x2xbf16>
    %cst_38 = arith.constant dense<0.000000e+00> : vector<32x32xf32>
    %89 = tpu.matmul %87, %88, %cst_38 {dimension_numbers = #tpu.dot_dimension_numbers<[1], [1], [0], [0], [0, 0, 1, 0], [], []>} : vector<32x2xbf16>, vector<32x2xbf16>, vector<32x32xf32> -> vector<32x32xf32>
    %cst_39 = arith.constant 2.000000e-01 : f32
    %90 = vector.broadcast %cst_39 : f32 to vector<32x32xf32>
    %91 = arith.mulf %90, %89 : vector<32x32xf32>
    %92 = arith.maximumf %89, %91 : vector<32x32xf32>
    %93 = arith.addf %92, %9 : vector<32x32xf32>
    %cst_40 = arith.constant dense<0xFF800000> : vector<32xf32>
    %94 = vector.multi_reduction <maximumf>, %93, %cst_40 [1] : vector<32x32xf32> to vector<32xf32>
    %95 = vector.shape_cast %94 : vector<32xf32> to vector<32x1xf32>
    %96 = vector.broadcast %95 : vector<32x1xf32> to vector<32x32xf32>
    %97 = arith.subf %93, %96 : vector<32x32xf32>
    %98 = math.exp %97 : vector<32x32xf32>
    %cst_41 = arith.constant dense<0.000000e+00> : vector<32xf32>
    %99 = vector.multi_reduction <add>, %98, %cst_41 [1] : vector<32x32xf32> to vector<32xf32>
    %100 = vector.shape_cast %99 : vector<32xf32> to vector<32x1xf32>
    %101 = tpu.reciprocal %100 {approx = true} : vector<32x1xf32> -> vector<32x1xf32>
    %102 = vector.broadcast %101 : vector<32x1xf32> to vector<32x32xf32>
    %103 = arith.mulf %98, %102 : vector<32x32xf32>
    %104 = arith.truncf %103 : vector<32x32xf32> to vector<32x32xbf16>
    %105 = arith.truncf %82 : vector<32x128xf32> to vector<32x128xbf16>
    %cst_42 = arith.constant dense<0.000000e+00> : vector<32x128xf32>
    %106 = tpu.matmul %104, %105, %cst_42 {dimension_numbers = #tpu.dot_dimension_numbers<[1], [0], [0], [1], [0, 0, 1, 1], [], []>} : vector<32x32xbf16>, vector<32x128xbf16>, vector<32x128xf32> -> vector<32x128xf32>
    %c2_43 = arith.constant 2 : index
    %c0_44 = arith.constant 0 : index
    %c0_45 = arith.constant 0 : index
    %107 = vector.load %arg7[%c2_43, %c0_44, %c0_45] : memref<3x1x128xf32, #tpu.memory_space<vmem>>, vector<1x1x128xf32>
    %108 = vector.shape_cast %107 : vector<1x1x128xf32> to vector<1x128xf32>
    %109 = vector.broadcast %108 : vector<1x128xf32> to vector<32x128xf32>
    %110 = arith.addf %106, %109 : vector<32x128xf32>
    %c0_46 = arith.constant 0 : index
    %c0_47 = arith.constant 0 : index
    %c0_48 = arith.constant 0 : index
    %111 = vector.load %arg3[%c0_46, %c0_47, %c0_48] : memref<1x4x32xbf16, #tpu.memory_space<vmem>>, vector<1x4x32xbf16>
    %112 = vector.shape_cast %111 : vector<1x4x32xbf16> to vector<4x32xbf16>
    %113 = arith.truncf %110 : vector<32x128xf32> to vector<32x128xbf16>
    %cst_49 = arith.constant dense<0.000000e+00> : vector<4x128xf32>
    %114 = tpu.matmul %112, %113, %cst_49 {dimension_numbers = #tpu.dot_dimension_numbers<[1], [0], [0], [1], [0, 0, 1, 1], [], []>} : vector<4x32xbf16>, vector<32x128xbf16>, vector<4x128xf32> -> vector<4x128xf32>
    %115 = arith.truncf %114 : vector<4x128xf32> to vector<4x128xbf16>
    %c0_50 = arith.constant 0 : index
    %c0_51 = arith.constant 0 : index
    %116 = vector.load %arg8[%c0_50, %c0_51] : memref<128x128xbf16, #tpu.memory_space<vmem>>, vector<128x128xbf16>
    %cst_52 = arith.constant dense<0.000000e+00> : vector<4x128xf32>
    %117 = tpu.matmul %115, %116, %cst_52 {dimension_numbers = #tpu.dot_dimension_numbers<[1], [0], [0], [1], [0, 0, 1, 1], [], []>} : vector<4x128xbf16>, vector<128x128xbf16>, vector<4x128xf32> -> vector<4x128xf32>
    %c0_53 = arith.constant 0 : index
    %c0_54 = arith.constant 0 : index
    %118 = vector.load %arg9[%c0_53, %c0_54] : memref<1x128xf32, #tpu.memory_space<vmem>>, vector<1x128xf32>
    %119 = vector.broadcast %118 : vector<1x128xf32> to vector<4x128xf32>
    %120 = arith.addf %117, %119 : vector<4x128xf32>
    %c0_55 = arith.constant 0 : index
    %c0_56 = arith.constant 0 : index
    %c0_57 = arith.constant 0 : index
    %121 = vector.load %arg10[%c0_55, %c0_56, %c0_57] : memref<1x4x128xf32, #tpu.memory_space<vmem>>, vector<1x4x128xf32>
    %122 = vector.shape_cast %121 : vector<1x4x128xf32> to vector<4x128xf32>
    %123 = vector.shape_cast %120 : vector<4x128xf32> to vector<1x4x128xf32>
    tpu.vector_store %arg10[%c0_55, %c0_56, %c0_57], %123 {strides = array<i32>} : memref<1x4x128xf32, #tpu.memory_space<vmem>>, vector<1x4x128xf32>,
    return
  }
  func.func @transform_0(%arg0: i32) -> (i32, i32, i32) {
    %c0_i32 = arith.constant 0 : i32
    %c0_i32_0 = arith.constant 0 : i32
    %c0_i32_1 = arith.constant 0 : i32
    return %arg0, %c0_i32, %c0_i32_0 : i32, i32, i32
  }
  func.func @transform_1(%arg0: i32) -> (i32, i32, i32) {
    %c0_i32 = arith.constant 0 : i32
    %c0_i32_0 = arith.constant 0 : i32
    %c0_i32_1 = arith.constant 0 : i32
    return %arg0, %c0_i32, %c0_i32_0 : i32, i32, i32
  }
  func.func @transform_2(%arg0: i32) -> (i32, i32, i32) {
    %c0_i32 = arith.constant 0 : i32
    %c0_i32_0 = arith.constant 0 : i32
    %c0_i32_1 = arith.constant 0 : i32
    return %arg0, %c0_i32, %c0_i32_0 : i32, i32, i32
  }
  func.func @transform_3(%arg0: i32) -> (i32, i32) {
    %c0_i32 = arith.constant 0 : i32
    %c0_i32_0 = arith.constant 0 : i32
    %c0_i32_1 = arith.constant 0 : i32
    return %c0_i32, %c0_i32_0 : i32, i32
  }
  func.func @transform_4(%arg0: i32) -> (i32, i32) {
    %c0_i32 = arith.constant 0 : i32
    %c0_i32_0 = arith.constant 0 : i32
    %c0_i32_1 = arith.constant 0 : i32
    return %c0_i32, %c0_i32_0 : i32, i32
  }
  func.func @transform_5(%arg0: i32) -> (i32, i32, i32) {
    %c0_i32 = arith.constant 0 : i32
    %c0_i32_0 = arith.constant 0 : i32
    %c0_i32_1 = arith.constant 0 : i32
    %c0_i32_2 = arith.constant 0 : i32
    return %c0_i32, %c0_i32_0, %c0_i32_1 : i32, i32, i32
  }
  func.func @transform_6(%arg0: i32) -> (i32, i32, i32) {
    %c0_i32 = arith.constant 0 : i32
    %c0_i32_0 = arith.constant 0 : i32
    %c0_i32_1 = arith.constant 0 : i32
    %c0_i32_2 = arith.constant 0 : i32
    return %c0_i32, %c0_i32_0, %c0_i32_1 : i32, i32, i32
  }
  func.func @transform_7(%arg0: i32) -> (i32, i32) {
    %c0_i32 = arith.constant 0 : i32
    %c0_i32_0 = arith.constant 0 : i32
    %c0_i32_1 = arith.constant 0 : i32
    return %c0_i32, %c0_i32_0 : i32, i32
  }
  func.func @transform_8(%arg0: i32) -> (i32, i32) {
    %c0_i32 = arith.constant 0 : i32
    %c0_i32_0 = arith.constant 0 : i32
    %c0_i32_1 = arith.constant 0 : i32
    return %c0_i32, %c0_i32_0 : i32, i32
  }
  func.func @transform_9(%arg0: i32) -> (i32, i32, i32) {
    %c0_i32 = arith.constant 0 : i32
    %c0_i32_0 = arith.constant 0 : i32
    %c0_i32_1 = arith.constant 0 : i32
    return %arg0, %c0_i32, %c0_i32_0 : i32, i32, i32
  }
}

</mosaic_0001>

<bundles_post_ra>
// kernel: tpu_custom_call.1
= control target key start
LH: loop header
LB: loop body
LE: loop exit
PB: predicated region body
PF: predicated region fallthrough
CT: control target
= control target key end

     0   :  { %s2970_s0 = inlined_call_operand.vmem [shape: bf16[2,32,8], index: 0, kind: input, shape index: {}]   ;;  %s2971_s1 = inlined_call_operand.hbm [shape: bf16[2,32,32], index: 1, kind: input, shape index: {}]   ;;  %s2972_s2 = inlined_call_operand.hbm [shape: bf16[2,4,32], index: 2, kind: input, shape index: {}]   ;;  %s2973_s3 = inlined_call_operand.hbm [shape: bf16[8,128], index: 3, kind: input, shape index: {}]   ;;  %s2974_s4 = inlined_call_operand.vmem [shape: f32[1,128], index: 4, kind: input, shape index: {}]   ;;  %s2975_s5 = inlined_call_operand.hbm [shape: bf16[3,128,128], index: 5, kind: input, shape index: {}]   ;;  %s2976_s6 = inlined_call_operand.hbm [shape: f32[3,1,128], index: 6, kind: input, shape index: {}]   ;;  %s2977_s7 = inlined_call_operand.vmem [shape: bf16[128,128], index: 7, kind: input, shape index: {}]   ;;  %s2978_s8 = inlined_call_operand.vmem [shape: f32[1,128], index: 8, kind: input, shape index: {}]   ;;  %s2979_s9 = inlined_call_operand.hbm [shape: f32[2,4,128], index: 9, kind: output, shape index: {}]  }
   0x1   :  { %2988 = sst [smem:[#allocation20_spill]] %s2971_s1 }
   0x2   :  { %2989 = sst [smem:[#allocation21_spill]] %s2973_s3 }
   0x3   :  { %2990 = sst [smem:[#allocation22_spill]] %s2975_s5 }
   0x4   :  { %2991 = sst [smem:[#allocation23_spill]] %s2976_s6 }
   0x5   :  { %14 = vsyncpa [#allocation3], 0 }
   0x6   :  { %16 = vsyncpa [#allocation3 + $0x1], 0 }
   0x7   :  { %17 = vsyncpa [#allocation6], 0 }
   0x8   :  { %19 = vsyncpa [#allocation6 + $0x1], 0 }
   0x9   :  { %20 = vsyncpa [#allocation9], 0 }
   0xa   :  { %21 = vsyncpa [#allocation4], 0 }
   0xb   :  { %23 = vsyncpa [#allocation4 + $0x1], 0  ;;  %s2546_s30 = smov 0   ;;  %s2548_s10 = smov 0  }
   0xc   :  { %s2550_s11 = smov 0   ;;  %s2552_s12 = smov 0  }
   0xd LB: > { %2992 = sst [smem:[#allocation17_spill]] %s2477_s11  ;;  %s2567_s13 = sadd.s32 4294967295, %s2481_s12   ;;  %s2481_s12 = sphi %s2552_s12, %s3024_s12   ;;  %s2477_s11 = sphi %s2550_s11, %s3021_s11   ;;  %s2473_s10 = sphi %s2548_s10, %s3023_s10   ;;  %s2469_s30 = sphi %s2546_s30, %s3022_s30  }
   0xe   : > { %s1781_s14 = sadd.s32 4294967294, %s2481_s12   ;;  %p75_p0 = scmp.ne.s32.totalorder %s2473_s10, %s2469_s30 }
   0xf   : > { %p2980_p1 = scmp.eq.s32.totalorder %s2567_s13, 0  ;;  %p257_p3 = scmp.eq.s32.totalorder %s1781_s14, 1 }
  0x10   : > { %p1782_p5 = scmp.ge.s32.totalorder %s2481_s12, 1  ;;  %p264_p7 = scmp.lt.s32.totalorder %s2481_s12, 3 }
  0x11   : > { %p2576_p4 = por %p2980_p1, %p75_p0  ;;  %p2581_p6 = por %p257_p3, %p75_p0 }
  0x12   : > { %p2586_p8 = pnand %p1782_p5, %p264_p7  ;;  %s2483_s18 = smov [#allocation7]  }
  0x13   : > { %s2993_s15 = scalar_select %p2576_p4, 1, 0 }
  0x14   : > { %s2994_s16 = scalar_select %p2581_p6, 1, 0 }
  0x15   : > { %s2996_s17 = scalar_select %p2586_p8, 1, 0 }
  0x16   : > { %2995 = sst [smem:[#allocation18_spill]] %s2994_s16  ;;  %s277_s19 = sshll.u32 %s2483_s18, 4  ;;  %s278_s19 = int_to_ptr.vmem [resolvable:$true] %s277_s19 }
  0x17   : > { %p2106_p10 = pneg %p2586_p8  ;;  %s2484_s20 = smov [#allocation8]  }
  0x18   : > { %s290_s21 = sshll.u32 %s2484_s20, 4  ;;  %s2485_s23 = smov [#allocation10]   ;;  %s2599_s21 = int_to_ptr.vmem [resolvable:$true] %s290_s21 }
  0x19   : > { %p2595_p11 = pnand %p2106_p10, %p2980_p1  ;;  %s2601_s24 = sshll.u32 %s2485_s23, 4  ;;  %s304_s24 = int_to_ptr.vmem [resolvable:$true] %s2601_s24 }
  0x1a   : > { %s2998_s3 = sld [smem:[#allocation21_spill]] }
  0x1b   : > { %p2611_p13 = pneg %p2595_p11 }
  0x20   : > { %s2259_s27 = scalar_lea.hbm %s2998_s3, 64 }
  0x21   : > { %p2260_p12 = scmp.ne.s32.totalorder %s2998_s3, %s2259_s27  ;;  %p2266_p5 = scmp.lt.u32.totalorder %s2259_s27, %s2998_s3 }
  0x23   : > { %p2262_p0 = pnand %p2611_p13, %p2260_p12 }
  0x25   : > { %p2263_p3 = pneg %p2262_p0 }
  0x27   : > { %p2268_p7 = pnand %p2266_p5, %p2263_p3 }
  0x29   : > { %2271 = shalt.err (!%p2268_p7)
}
  0x2a   : > { %s2272_s23 = scalar_lea.vmem %s278_s19, 64  ;;  %p2280_p2 = scmp.lt.s32.totalorder %s278_s19, %s278_s19 }
  0x2b   : > { %p2273_p10 = scmp.ne.s32.totalorder %s278_s19, %s2272_s23  ;;  %p2281_p6 = scmp.lt.s32.totalorder %s2272_s23, %s2272_s23 }
  0x2d   : > { %p2275_p9 = pnand %p2273_p10, %p2611_p13  ;;  %p2282_p4 = por %p2281_p6, %p2280_p2 }
  0x2f   : > { %p2276_p1 = pneg %p2275_p9 }
  0x31   : > { %p2283_p8 = pnand %p2282_p4, %p2276_p1 }
  0x33   : > { %2286 = shalt.err (!%p2283_p8)
}
  0x34   : > { %2109 = dma.hbm_to_vmem [thread:$0]  (!%p2595_p11), %s2998_s3, 64, %s278_s19, [#allocation6]  }
  0x35   : > { %s3000_s5 = sld [smem:[#allocation22_spill]] }
  0x3b   : > { %s2287_s29 = scalar_lea.hbm %s3000_s5, 3072 }
  0x3c   : > { %p2288_p9 = scmp.ne.s32.totalorder %s3000_s5, %s2287_s29  ;;  %p2294_p1 = scmp.lt.u32.totalorder %s2287_s29, %s3000_s5 }
  0x3e   : > { %p2290_p12 = pnand %p2288_p9, %p2611_p13 }
  0x40   : > { %p2291_p2 = pneg %p2290_p12 }
  0x42   : > { %p2296_p4 = pnand %p2294_p1, %p2291_p2 }
  0x44   : > { %2299 = shalt.err (!%p2296_p4)
}
  0x45   : > { %s2300_s19 = scalar_lea.vmem %s2599_s21, 3072  ;;  %p2308_p3 = scmp.lt.s32.totalorder %s2599_s21, %s2599_s21 }
  0x46   : > { %p2301_p6 = scmp.ne.s32.totalorder %s2599_s21, %s2300_s19  ;;  %p2309_p5 = scmp.lt.s32.totalorder %s2300_s19, %s2300_s19 }
  0x48   : > { %p2303_p8 = pnand %p2301_p6, %p2611_p13  ;;  %p2310_p7 = por %p2309_p5, %p2308_p3 }
  0x4a   : > { %p2304_p0 = pneg %p2303_p8 }
  0x4c   : > { %p2311_p10 = pnand %p2310_p7, %p2304_p0 }
  0x4e   : > { %2314 = shalt.err (!%p2311_p10)
}
  0x4f   : > { %s2984_s25 = smov 64   ;;  %s2985_s16 = smov 4  }
  0x50   : > { %2112 = dma.hbm_to_vmem [thread:$0]  (!%p2595_p11), %s3000_s5, 3072, %s2599_s21, [#allocation9], %s2984_s25, %s2984_s25, %s2985_s16  }
  0x51   : > { %s3001_s6 = sld [smem:[#allocation23_spill]] }
  0x57   : > { %s2315_s18 = scalar_lea.hbm %s3001_s6, 48 }
  0x58   : > { %p2316_p9 = scmp.ne.s32.totalorder %s3001_s6, %s2315_s18  ;;  %p2322_p1 = scmp.lt.u32.totalorder %s2315_s18, %s3001_s6 }
  0x5a   : > { %p2318_p12 = pnand %p2316_p9, %p2611_p13 }
  0x5c   : > { %p2319_p2 = pneg %p2318_p12 }
  0x5e   : > { %p2324_p4 = pnand %p2322_p1, %p2319_p2 }
  0x60   : > { %2327 = shalt.err (!%p2324_p4)
}
  0x61   : > { %s2328_s26 = scalar_lea.vmem %s304_s24, 48  ;;  %s2335_s21 = scalar_lea.vmem %s304_s24, 64 }
  0x62   : > { %p2329_p6 = scmp.ne.s32.totalorder %s304_s24, %s2328_s26  ;;  %p2336_p3 = scmp.lt.s32.totalorder %s304_s24, %s304_s24 }
  0x63   : > { %p2337_p5 = scmp.lt.s32.totalorder %s2335_s21, %s2328_s26 }
  0x64   : > { %p2331_p8 = pnand %p2329_p6, %p2611_p13 }
  0x65   : > { %p2338_p7 = por %p2337_p5, %p2336_p3 }
  0x66   : > { %p2332_p0 = pneg %p2331_p8 }
  0x68   : > { %p2339_p10 = pnand %p2338_p7, %p2332_p0 }
  0x6a   : > { %2342 = shalt.err (!%p2339_p10)
}
  0x6b   : > { %s2488_s27 = smov 16   ;;  %s2489_s3 = smov 1  }
  0x6c   : > { %2115 = dma.hbm_to_vmem [thread:$0]  (!%p2595_p11), %s3001_s6, 48, %s304_s24, [#allocation9], %s2488_s27, %s2488_s27, %s2489_s3  }
  0x6d   : > { %s2673_s29 = sadd.s32 1, %s2481_s12   ;;  %s62_s20 = sadd.s32 1, %s2477_s11 }
  0x6e   : > { %s59_s18 = ssub.s32 %s2481_s12, %s2673_s29  ;;  %p69_p9 = scmp.ne.s32.totalorder %s2477_s11, %s2473_s10 }
  0x6f   : > { %p60_p13 = scmp.eq.s32.totalorder %s59_s18, 0  ;;  %p70_p12 = scmp.eq.s32.totalorder %s2481_s12, 0 }
  0x70   : > { %p2130_p2 = scmp.lt.s32.totalorder %s2481_s12, 2  ;;  %p3003_p4 = scmp.eq.s32.totalorder %s2567_s13, 1 }
  0x71   : > { %s2683_s23 = scalar_select %p60_p13, %s2477_s11, %s62_s20  }
  0x72   : > { %p71_p1 = por %p70_p12, %p69_p9  ;;  %p2687_p6 = por %p3003_p4, %p69_p9 }
  0x73   : > { %3002 = sst [smem:[#allocation19_spill]] %s2683_s23  ;;  %s2692_s19 = sand.u32 1, %s2477_s11  }
  0x74   : > { %s3004_s22 = scalar_select %p2687_p6, 1, 0 }
  0x75   : > { %s1859_s24 = sshll.u32 %s2481_s12, 8  ;;  %s1787_s26 = sshll.u32 %s2692_s19, 4 }
  0x76   : > { %s3005_s1 = sld [smem:[#allocation20_spill]]  ;;  %s335_s14 = scalar_lea.vmem [#allocation2], %s1787_s26 }
  0x77   : > { %s342_s28 = sshll.u32 %s335_s14, 4  ;;  %p2701_p11 = pnand %p2130_p2, %p71_p1  ;;  %s2705_s28 = int_to_ptr.vmem [resolvable:$true] %s342_s28 }
  0x78   : > { %s332_s25 = scalar_lea.sflag [#allocation3], %s2692_s19 }
  0x79   : > { %p2345_p0 = pneg %p2701_p11 }
  0x7c   : > { %s2699_s3 = scalar_lea.hbm %s3005_s1, %s1859_s24  ;;  %s2348_s21 = scalar_lea.hbm %s3005_s1, 512 }
  0x7d   : > { %s2343_s16 = scalar_lea.hbm %s2699_s3, 256  ;;  %p2349_p7 = scmp.lt.u32.totalorder %s2699_s3, %s3005_s1 }
  0x7e   : > { %p2344_p8 = scmp.ne.s32.totalorder %s2699_s3, %s2343_s16  ;;  %p2350_p10 = scmp.lt.u32.totalorder %s2348_s21, %s2343_s16 }
  0x7f   : > { %p2352_p9 = scmp.lt.u32.totalorder %s2343_s16, %s2699_s3 }
  0x80   : > { %p2346_p3 = pnand %p2345_p0, %p2344_p8  ;;  %p2351_p13 = por %p2350_p10, %p2349_p7 }
  0x82   : > { %p2347_p5 = pneg %p2346_p3  ;;  %p2353_p12 = por %p2352_p9, %p2351_p13 }
  0x84   : > { %p2354_p2 = pnand %p2353_p12, %p2347_p5 }
  0x86   : > { %2357 = shalt.err (!%p2354_p2)
}
  0x87   : > { %s2358_s20 = scalar_lea.vmem %s2705_s28, 256  ;;  %s2490_s24 = smov [#allocation2]  }
  0x88   : > { %p2359_p1 = scmp.ne.s32.totalorder %s2705_s28, %s2358_s20  ;;  %s2363_s26 = sshll.u32 %s2490_s24, 4  ;;  %s2364_s26 = int_to_ptr.vmem [resolvable:$false] %s2363_s26 }
  0x89   : > { %s2365_s27 = scalar_lea.vmem %s2364_s26, 512  ;;  %p2366_p3 = scmp.lt.s32.totalorder %s2705_s28, %s2364_s26 }
  0x8a   : > { %p2361_p4 = pnand %p2359_p1, %p2345_p0  ;;  %p2367_p7 = scmp.lt.s32.totalorder %s2365_s27, %s2358_s20 }
  0x8c   : > { %p2362_p8 = pneg %p2361_p4  ;;  %p2368_p10 = por %p2367_p7, %p2366_p3 }
  0x8e   : > { %p2369_p13 = pnand %p2368_p10, %p2362_p8 }
  0x90   : > { %2372 = shalt.err (!%p2369_p13)
}
  0x91   : > { %s3007_s16 = smov 4   ;;  %s3008_s21 = smov 64  }
  0x92   : > { %2119 = dma.hbm_to_vmem [thread:$0]  (!%p2701_p11), %s2699_s3, 256, %s2705_s28, %s332_s25, %s3008_s21, %s3008_s21, %s3007_s16  }
  0x93   : > { %s1790_s14 = sshll.u32 %s2692_s19, 1  ;;  %s1791_s24 = sshll.u32 %s2481_s12, 5 }
  0x94   : > { %s2744_s27 = scalar_lea.hbm %s2972_s2, %s1791_s24  ;;  %s356_s1 = scalar_lea.vmem [#allocation5], %s1790_s14 }
  0x95   : > { %s363_s5 = sshll.u32 %s356_s1, 4  ;;  %s3009_s6 = sand.u32 1, %s2481_s12   ;;  %s364_s5 = int_to_ptr.vmem [resolvable:$true] %s363_s5 }
  0x96   : > { %s353_s23 = scalar_lea.sflag [#allocation6], %s3009_s6  ;;  %s2373_s11 = scalar_lea.hbm %s2744_s27, 32 }
  0x97   : > { %p2374_p5 = scmp.ne.s32.totalorder %s2744_s27, %s2373_s11  ;;  %s2378_s3 = scalar_lea.hbm %s2972_s2, 64 }
  0x98   : > { %p2379_p2 = scmp.lt.u32.totalorder %s2744_s27, %s2972_s2  ;;  %p2380_p1 = scmp.lt.u32.totalorder %s2378_s3, %s2373_s11 }
  0x99   : > { %p2376_p9 = pnand %p2374_p5, %p2345_p0  ;;  %p2382_p8 = scmp.lt.u32.totalorder %s2373_s11, %s2744_s27 }
  0x9a   : > { %p2381_p4 = por %p2380_p1, %p2379_p2 }
  0x9b   : > { %p2377_p12 = pneg %p2376_p9 }
  0x9c   : > { %p2383_p3 = por %p2382_p8, %p2381_p4 }
  0x9e   : > { %p2384_p7 = pnand %p2383_p3, %p2377_p12 }
  0xa0   : > { %2387 = shalt.err (!%p2384_p7)
}
  0xa1   : > { %s2388_s1 = scalar_lea.vmem %s364_s5, 32  ;;  %s2491_s6 = smov [#allocation5]  }
  0xa2   : > { %p2389_p10 = scmp.ne.s32.totalorder %s364_s5, %s2388_s1  ;;  %s2393_s21 = sshll.u32 %s2491_s6, 4  ;;  %s2394_s21 = int_to_ptr.vmem [resolvable:$false] %s2393_s21 }
  0xa3   : > { %s2395_s14 = scalar_lea.vmem %s2394_s21, 64  ;;  %p2396_p9 = scmp.lt.s32.totalorder %s364_s5, %s2394_s21 }
  0xa4   : > { %p2391_p13 = pnand %p2389_p10, %p2345_p0  ;;  %p2397_p6 = scmp.lt.s32.totalorder %s2395_s14, %s2388_s1 }
  0xa6   : > { %p2392_p5 = pneg %p2391_p13  ;;  %p2398_p1 = por %p2397_p6, %p2396_p9 }
  0xa8   : > { %p2399_p2 = pnand %p2398_p1, %p2392_p5 }
  0xaa   : > { %2402 = shalt.err (!%p2399_p2)
}
  0xab   : > { %2122 = dma.hbm_to_vmem [thread:$0]  (!%p2701_p11), %s2744_s27, 32, %s364_s5, %s353_s23  }
  0xac   : > { %p3010_p12 = scmp.ne.s32.totalorder %s2996_s17, 0 }
  0xad   : > { %s2770_s11 = sand.u32 (!%p3010_p12), 1, %s2473_s10   ;;  %p3011_p6 = scmp.ne.s32.totalorder (!%p3010_p12), %s2993_s15, 0 }
  0xae   : > { %372 = sbr.rel (%p3010_p12) target bundleno = 4209 (0x1071), region = 56  ;;  %s1793_s24 = sshll.u32 (!%p3010_p12), %s2770_s11, 4 }
  0xaf   : > { %s375_s20 = scalar_lea.sflag (!%p3010_p12), [#allocation3], %s2770_s11  ;;  %s2774_s26 = scalar_lea.vmem (!%p3010_p12), [#allocation2], %s1793_s24 }
  0xb5   : > { %2448 = dma.done.wait (%p3011_p6), %s375_s20, 256  }
  0xb6   : > { %2450 = vsyncadd (%p3011_p6), %s375_s20, 4294967040  ;;  %s383_s5 = sand.u32 1, %s2567_s13   ;;  %s1794_s17 = sshll.u32 %s2770_s11, 1 }
  0xb7   : > { %s384_s23 = scalar_lea.sflag [#allocation6], %s383_s5  ;;  %s2782_s18 = scalar_lea.vmem [#allocation5], %s1794_s17 }
  0xb8   : > { %2452 = dma.done.wait (%p3011_p6), %s384_s23, 32  }
  0xb9   : > { %2454 = vsyncadd (%p3011_p6), %s384_s23, 4294967264  ;;  %p3012_p11 = scmp.eq.s32.totalorder %s2567_s13, 0 }
  0xbb   : > { %2456 = dma.done.wait (%p3012_p11), [#allocation6], 64   ;;  %p3013_p0 = pmov %p3012_p11 }
  0xbd   : > { %2458 = vsyncadd (%p3013_p0), [#allocation6], 4294967232  ;;  %p3014_p4 = pmov %p3013_p0 }
  0xbe   : > { %p3015_p8 = pmov %p3013_p0 }
  0xbf   : > { %2460 = dma.done.wait (%p3014_p4), [#allocation9], 3120  }
  0xc0   : > { %2462 = vsyncadd (%p3015_p8), [#allocation9], 4294964176  ;;  %p444_p3 = scmp.lt.s32.totalorder %s2567_s13, 1  ;;  %vm480_vm0 = vcmask 1043456   ;;  %vm473_vm1 = vcmask 64512   ;;  %v2179_v4 = vld [vmem:[#allocation8] sm:$0xff]  }
  0xc1   : > { %v455_v0 = vld [vmem:[#allocation7] sm:$0xf]  ;;  %v2180_v5 = vld [vmem:[#allocation8 + $0x8] sm:$0xff]   ;;  %1945 = vmatprep.subr.bf16.mxu1 %v2179_v4  ;;  %v2181_v6 = vld [vmem:[#allocation8 + $0x10] sm:$0xff]   ;;  %s2492_s1 = smov 96   ;;  %vm664_vm2 = vcmask 7168  }
  0xc2   : > { %s445_s27 = scalar_select %p444_p3, %s2567_s13, 1  ;;  %2081 = vmatprep.subr.msk.bf16.mxu0 %vm480_vm0, %v455_v0  ;;  %v482_v1 = vsel %vm480_vm0, %v455_v0, 0  ;;  %1946 = vmatpush3.bf16.msra.mxu1 %v2179_v4  ;;  %v2182_v7 = vld [vmem:[#allocation8 + $0x18] sm:$0xff]   ;;  %v2183_v8 = vld [vmem:[#allocation8 + $0x20] sm:$0xff]   ;;  %v2184_v9 = vld [vmem:[#allocation8 + $0x28] sm:$0xff]   ;;  %vm672_vm3 = vcmask 15360  }
  0xc3   : > { %1940 = vmatpush3.bf16.msra.mxu0 %v482_v1  ;;  %1947 = vmatprep.subr.bf16.mxu1 %v2180_v5  ;;  %v2185_v10 = vld [vmem:[#allocation8 + $0x30] sm:$0xff]   ;;  %v2186_v11 = vld [vmem:[#allocation8 + $0x38] sm:$0xff]   ;;  %vm742_vm4 = vcmask 261120   ;;  %vm2494_vm5 = vmmov 0   ;;  %s1635_s17 = scalar_lea.sflag [#allocation4], %s2770_s11  ;;  %p3016_p10 = scmp.ne.s32.totalorder %s3004_s22, 0 }
  0xc4   : > { %s1860_s25 = sshll.u32 %s445_s27, 4  ;;  %v1801_v13 = vld [vmem:[%s2974_s4] ss:$0 sm:$0xff]  ;;  %v1869_v37 = vld [vmem:[%s2774_s26 + $0x8] sm:$0xff]   ;;  %s2495_s23 = smov [#allocation11]  }
  0xc5   : > { %s448_s3 = scalar_lea.vmem %s2970_s0, %s1860_s25  ;;  %v1862_v38 = vld [vmem:[%s2774_s26] sm:$0xff]   ;;  %v2818_v42 = vunpack.c.l.bf16 %v1869_v37  ;;  %v2829_v59 = vunpack.c.h.bf16 %v1869_v37  ;;  %v2191_v37 = vld [vmem:[#allocation8 + $0x60] sm:$0xff]   ;;  %s2407_s27 = sshll.u32 %s2495_s23, 4  ;;  %s2408_s27 = int_to_ptr.vmem [resolvable:$false] %s2407_s27 }
  0xc6   : > { %v2177_v2 = vld [vmem:[%s448_s3] sm:$0xff]   ;;  %v2178_v3 = vld [vmem:[%s448_s3 + $0x8] sm:$0xff]   ;;  %1948 = vmatpush3.bf16.msra.mxu1 %v2180_v5  ;;  %v2820_v45 = vunpack.c.l.bf16 %v1862_v38  ;;  %v2822_v51 = vunpack.c.h.bf16 %v1862_v38  ;;  %v2192_v38 = vld [vmem:[#allocation8 + $0x68] sm:$0xff]   ;;  %s2409_s25 = scalar_lea.vmem %s2408_s27, 128 }
  0xc7   : > { %1941 = vmatprep.mubr.msk.bf16.mxu0 %vm473_vm1, %v2177_v2  ;;  %1949 = vmatprep.subr.bf16.mxu1 %v2181_v6 }
  0xc8   : > { %1942 = vmatmul.mubr.msk.bf16.vlgmr.msra.gmra.mrb[0].mxu0 %vm473_vm1, %v2178_v3 }
  0xca   : > { %1950 = vmatpush3.bf16.msra.mxu1 %v2181_v6 }
  0xcb   : > { %1951 = vmatprep.subr.bf16.mxu1 %v2182_v7 }
  0xce   : > { %1952 = vmatpush3.bf16.msra.mxu1 %v2182_v7 }
  0xcf   : > { %1953 = vmatprep.subr.bf16.mxu1 %v2183_v8 }
  0xd2   : > { %1954 = vmatpush3.bf16.msra.mxu1 %v2183_v8 }
  0xd3   : > { %1955 = vmatprep.subr.bf16.mxu1 %v2184_v9 }
  0xd6   : > { %1956 = vmatpush3.bf16.msra.mxu1 %v2184_v9 }
  0xd7   : > { %1957 = vmatprep.subr.bf16.mxu1 %v2185_v10 }
  0xda   : > { %1958 = vmatpush3.bf16.msra.mxu1 %v2185_v10 }
  0xdb   : > { %1959 = vmatprep.subr.bf16.mxu1 %v2186_v11 }
  0xde   : > { %1960 = vmatpush3.bf16.msra.mxu1 %v2186_v11 }
 0x19b   : > { %v1943_v12 = vpop.f32.mrb[0].mxu0 }
 0x19c   : > { %v518_v14 = vpop.f32.mrb[1].mxu0  ;;  %v527_v16 = vadd.f32 %v1943_v12, %v1801_v13 }
 0x19d   : > { %v1944_v15 = vpop.f32.mrb[2].mxu0  ;;  %v519_v19 = vadd.f32 %v1801_v13, %v518_v14 }
 0x19e   : > { %v530_v17 = vadd.f32 %v1944_v15, %v1801_v13  ;;  %v521_v18 = vpop.f32.mrb[3].mxu0 }
 0x19f   : > { %v522_v20 = vadd.f32 %v1801_v13, %v521_v18 }
 0x1a0   : > { %v542_v21 = vpack.c.bf16 %v530_v17, %v527_v16 }
 0x1a1   : > { %v541_v22 = vpack.c.bf16 %v522_v20, %v519_v19  ;;  %v2187_v19 = vld [vmem:[#allocation8 + $0x40] sm:$0xff]  }
 0x1a3   : > { %1961 = vmatprep.mubr.bf16.mxu1 %v541_v22 }
 0x1a4   : > { %1962 = vmatmul.mubr.bf16.vlgmr.msra.gmra.mrb[0].mxu1 %v542_v21 }
 0x277   : > { %v1963_v23 = vpop.f32.mrb[0].mxu1 }
 0x278   : > { %v641_v24 = vpop.f32.mrb[1].mxu1 }
 0x279   : > { %v1964_v25 = vpop.f32.mrb[2].mxu1 }
 0x27a   : > { %v657_v26 = vpack.c.bf16 %v1964_v25, %v1963_v23  ;;  %v644_v27 = vpop.f32.mrb[3].mxu1 }
 0x27b   : > { %v656_v28 = vpack.c.bf16 %v644_v27, %v641_v24 }
 0x27d   : > { %660 = vrot.lane.b32.xlu0 %v656_v28, %s2492_s1 }
 0x281   : > { %662 = vrot.lane.b32.xlu0 %v657_v26, %s2492_s1 }
 0x2ef   : > { %v661_v29 = vpop.permute.xlu0 %660 }
 0x2f0   : > { %v667_v30 = vsel %vm664_vm2, 1065369472, %v661_v29  ;;  %v670_v31 = vsel %vm664_vm2, %v661_v29, 1065369472 }
 0x2f1   : > { %v677_v32 = vsel %vm672_vm3, %v670_v31, 0  ;;  %2082 = vmatprep.subr.msk.bf16.mxu0 %vm672_vm3, %v670_v31  ;;  %1969 = vmatprep.mubr.msk.bf16.mxu0 %vm672_vm3, %v667_v30 }
 0x2f2   : > { %1966 = vmatpush3.bf16.xpose.msra.mxu0 %v677_v32 }
 0x2f3   : > { %v663_v33 = vpop.permute.xlu0 %662 }
 0x2f4   : > { %v671_v34 = vsel %vm664_vm2, %v663_v33, 1065369472  ;;  %v669_v36 = vsel %vm664_vm2, 1065369472, %v663_v33 }
 0x2f5   : > { %2083 = vmatprep.subr.msk.bf16.mxu0 %vm672_vm3, %v671_v34  ;;  %v679_v35 = vsel %vm672_vm3, %v671_v34, 0  ;;  %v2188_v34 = vld [vmem:[#allocation8 + $0x48] sm:$0xff]  }
 0x2fa   : > { %1968 = vmatpush3.bf16.xpose.msra.mxu0 %v679_v35  ;;  %v2189_v35 = vld [vmem:[#allocation8 + $0x50] sm:$0xff]  }
 0x2fb   : > { %1973 = vmatprep.subr.bf16.mxu0 %v656_v28 }
 0x301   : > { %1970 = vmatmul.mubr.msk.bf16.vlgmr.msra.gmra.mrb[4].mxu0 %vm672_vm3, %v669_v36  ;;  %v2190_v36 = vld [vmem:[#allocation8 + $0x58] sm:$0xff]  }
 0x302   : > { %1974 = vmatpush3.bf16.msra.mxu0 %v656_v28 }
 0x303   : > { %1975 = vmatprep.subr.bf16.mxu0 %v657_v26 }
 0x306   : > { %1976 = vmatpush3.bf16.msra.mxu0 %v657_v26 }
 0x307   : > { %1981 = vmatprep.subr.bf16.mxu0 %v2187_v19 }
 0x3d4   : > { %v1971_v39 = vpop.f32.mrb[4].mxu0 }
 0x3d5   : > { %v732_v40 = vmul.f32 0.2, %v1971_v39  ;;  %v715_v41 = vpop.f32.mrb[5].mxu0 }
 0x3d6   : > { %v730_v43 = vmul.f32 0.2, %v715_v41  ;;  %v1972_v44 = vpop.f32.mrb[6].mxu0 }
 0x3d7   : > { %v736_v46 = vmax.f32 %v1971_v39, %v732_v40  ;;  %v718_v47 = vpop.f32.mrb[7].mxu0  ;;  %v733_v49 = vmul.f32 0.2, %v1972_v44  ;;  %v2193_v39 = vld [vmem:[#allocation8 + $0x70] sm:$0xff]   ;;  %v2194_v40 = vld [vmem:[#allocation8 + $0x78] sm:$0xff]  }
 0x3d8   : > { %v734_v48 = vmax.f32 %v715_v41, %v730_v43  ;;  %v731_v50 = vmul.f32 0.2, %v718_v47  ;;  %v1816_v41 = vld [vmem:[#allocation10] ss:$0 sm:$0xff] }
 0x3d9   : > { %v740_v52 = vadd.f32 %v2818_v42, %v736_v46  ;;  %v737_v56 = vmax.f32 %v1972_v44, %v733_v49 }
 0x3da   : > { %v735_v53 = vmax.f32 %v718_v47, %v731_v50  ;;  %v738_v54 = vadd.f32 %v2820_v45, %v734_v48 }
 0x3db   : > { %v749_v55 = vsel %vm742_vm4, %v740_v52, -inf  ;;  %v741_v61 = vadd.f32 %v2829_v59, %v737_v56 }
 0x3dc   : > { %750 = vmax.xlane.f32.xlu0 %v749_v55  ;;  %v743_v57 = vsel %vm742_vm4, %v738_v54, -inf  ;;  %v739_v58 = vadd.f32 %v2822_v51, %v735_v53 }
 0x3dd   : > { %744 = vmax.xlane.f32.xlu1 %v743_v57  ;;  %v752_v62 = vsel %vm742_vm4, %v741_v61, -inf }
 0x3de   : > { %v746_v60 = vsel %vm742_vm4, %v739_v58, -inf }
 0x3e1   : > { %747 = vmax.xlane.f32.xlu1 %v746_v60 }
 0x3e5   : > { %753 = vmax.xlane.f32.xlu1 %v752_v62 }
 0x469   : > { %v751_v63 = vpop.xlane.xlu0 %750 }
 0x46a   : > { %v757_v0 = vsub.f32 %v740_v52, %v751_v63  ;;  %v745_v1 = vpop.xlane.xlu1 %744 }
 0x46b   : > { %v755_v2 = vsub.f32 %v738_v54, %v745_v1 }
 0x46c   : > { %v763_v3 = vmul.f32 1.442695, %v757_v0 }
 0x46d   : > { %v759_v4 = vmul.f32 1.442695, %v755_v2 }
 0x46e   : > { %2211 = vpow2.f32 %v763_v3  ;;  %v748_v5 = vpop.xlane.xlu1 %747 }
 0x46f   : > { %v756_v6 = vsub.f32 %v739_v58, %v748_v5  ;;  %2213 = vpow2.f32 %v759_v4 }
 0x471   : > { %v761_v7 = vmul.f32 1.442695, %v756_v6 }
 0x472   : > { %v754_v8 = vpop.xlane.xlu1 %753 }
 0x473   : > { %v758_v9 = vsub.f32 %v741_v61, %v754_v8  ;;  %2215 = vpow2.f32 %v761_v7 }
 0x475   : > { %v765_v10 = vmul.f32 1.442695, %v758_v9 }
 0x477   : > { %2217 = vpow2.f32 %v765_v10 }
 0x478   : > { %v2212_v11 = vpop.eup %2211 }
 0x479   : > { %v773_v12 = vsel %vm742_vm4, %v2212_v11, 0.0  ;;  %v2214_v13 = vpop.eup %2213 }
 0x47a   : > { %774 = vadd.xlane.f32.xlu1 %v773_v12  ;;  %v767_v14 = vsel %vm742_vm4, %v2214_v13, 0.0 }
 0x47d   : > { %v2216_v15 = vpop.eup %2215 }
 0x47e   : > { %768 = vadd.xlane.f32.xlu1 %v767_v14  ;;  %v770_v16 = vsel %vm742_vm4, %v2216_v15, 0.0 }
 0x481   : > { %v2218_v17 = vpop.eup %2217 }
 0x482   : > { %771 = vadd.xlane.f32.xlu1 %v770_v16  ;;  %v776_v18 = vsel %vm742_vm4, %v2218_v17, 0.0 }
 0x486   : > { %777 = vadd.xlane.f32.xlu1 %v776_v18 }
 0x507   : > { %v775_v20 = vpop.xlane.xlu1 %774 }
 0x50b   : > { %v769_v21 = vpop.xlane.xlu1 %768 }
 0x50c   : > { %2219 = vrcp.f32 %v769_v21 }
 0x50f   : > { %v772_v22 = vpop.xlane.xlu1 %771 }
 0x510   : > { %2221 = vrcp.f32 %v772_v22 }
 0x511   : > { %2223 = vrcp.f32 %v775_v20 }
 0x513   : > { %v778_v23 = vpop.xlane.xlu1 %777 }
 0x514   : > { %2225 = vrcp.f32 %v778_v23 }
 0x516   : > { %v2220_v24 = vpop.eup %2219 }
 0x517   : > { %v783_v26 = vmul.f32 %v2220_v24, %v2214_v13 }
 0x51a   : > { %v2222_v25 = vpop.eup %2221 }
 0x51b   : > { %v784_v27 = vmul.f32 %v2222_v25, %v2216_v15  ;;  %v2224_v28 = vpop.eup %2223 }
 0x51c   : > { %v785_v31 = vmul.f32 %v2224_v28, %v2212_v11 }
 0x51d   : > { %v787_v29 = vpack.c.bf16 %v784_v27, %v783_v26 }
 0x51e   : > { %v2226_v30 = vpop.eup %2225 }
 0x51f   : > { %v786_v32 = vmul.f32 %v2226_v30, %v2218_v17  ;;  %1977 = vmatprep.mubr.msk.bf16.mxu0 %vm742_vm4, %v787_v29 }
 0x521   : > { %v788_v33 = vpack.c.bf16 %v786_v32, %v785_v31 }
 0x523   : > { %1978 = vmatmul.mubr.msk.bf16.vlgmr.msra.gmra.mrb[8].mxu0 %vm742_vm4, %v788_v33 }
 0x524   : > { %1982 = vmatpush3.bf16.msra.mxu0 %v2187_v19 }
 0x525   : > { %1983 = vmatprep.subr.bf16.mxu0 %v2188_v34 }
 0x528   : > { %1984 = vmatpush3.bf16.msra.mxu0 %v2188_v34 }
 0x529   : > { %1985 = vmatprep.subr.bf16.mxu0 %v2189_v35 }
 0x52c   : > { %1986 = vmatpush3.bf16.msra.mxu0 %v2189_v35 }
 0x52d   : > { %1987 = vmatprep.subr.bf16.mxu0 %v2190_v36 }
 0x530   : > { %1988 = vmatpush3.bf16.msra.mxu0 %v2190_v36 }
 0x531   : > { %1989 = vmatprep.subr.bf16.mxu0 %v2191_v37 }
 0x534   : > { %1990 = vmatpush3.bf16.msra.mxu0 %v2191_v37 }
 0x535   : > { %1991 = vmatprep.subr.bf16.mxu0 %v2192_v38 }
 0x538   : > { %1992 = vmatpush3.bf16.msra.mxu0 %v2192_v38 }
 0x539   : > { %1993 = vmatprep.subr.bf16.mxu0 %v2193_v39 }
 0x53c   : > { %1994 = vmatpush3.bf16.msra.mxu0 %v2193_v39 }
 0x53d   : > { %1995 = vmatprep.subr.bf16.mxu0 %v2194_v40 }
 0x540   : > { %1996 = vmatpush3.bf16.msra.mxu0 %v2194_v40 }
 0x5f6   : > { %v1979_v43 = vpop.f32.mrb[8].mxu0 }
 0x5f7   : > { %v845_v44 = vadd.f32 %v1979_v43, %v1816_v41  ;;  %v836_v46 = vpop.f32.mrb[9].mxu0 }
 0x5f8   : > { %v837_v47 = vadd.f32 %v1816_v41, %v836_v46  ;;  %v1980_v48 = vpop.f32.mrb[10].mxu0 }
 0x5f9   : > { %v848_v49 = vadd.f32 %v1980_v48, %v1816_v41  ;;  %v839_v50 = vpop.f32.mrb[11].mxu0  ;;  %v853_v53 = vmax.f32 %v845_v44, 0.0 }
 0x5fa   : > { %v840_v52 = vadd.f32 %v1816_v41, %v839_v50  ;;  %v851_v55 = vmax.f32 %v837_v47, 0.0 }
 0x5fb   : > { %v854_v54 = vmax.f32 %v848_v49, 0.0 }
 0x5fc   : > { %v852_v56 = vmax.f32 %v840_v52, 0.0 }
 0x5fd   : > { %v856_v57 = vpack.c.bf16 %v854_v54, %v853_v53  ;;  %v2195_v53 = vld [vmem:[#allocation8 + $0x80] sm:$0xff]  }
 0x5fe   : > { %v855_v58 = vpack.c.bf16 %v852_v56, %v851_v55 }
 0x600   : > { %1997 = vmatprep.mubr.bf16.mxu0 %v855_v58 }
 0x601   : > { %1998 = vmatmul.mubr.bf16.vlgmr.msra.gmra.mrb[12].mxu0 %v856_v57 }
 0x6d4   : > { %v1999_v60 = vpop.f32.mrb[12].mxu0 }
 0x6d5   : > { %v956_v61 = vpop.f32.mrb[13].mxu0 }
 0x6d6   : > { %v2000_v62 = vpop.f32.mrb[14].mxu0 }
 0x6d7   : > { %v972_v63 = vpack.c.bf16 %v2000_v62, %v1999_v60  ;;  %v959_v0 = vpop.f32.mrb[15].mxu0 }
 0x6d8   : > { %v971_v1 = vpack.c.bf16 %v959_v0, %v956_v61 }
 0x6d9   : > { %977 = vrot.lane.b32.xlu0 %v972_v63, %s2492_s1 }
 0x6da   : > { %975 = vrot.lane.b32.xlu1 %v971_v1, %s2492_s1  ;;  %2009 = vmatprep.subr.bf16.mxu1 %v971_v1 }
 0x6db   : > { %2010 = vmatpush3.bf16.msra.mxu1 %v971_v1 }
 0x6dc   : > { %2011 = vmatprep.subr.bf16.mxu1 %v972_v63 }
 0x6df   : > { %2012 = vmatpush3.bf16.msra.mxu1 %v972_v63 }
 0x6e0   : > { %2017 = vmatprep.subr.bf16.mxu1 %v2195_v53 }
 0x74b   : > { %v978_v2 = vpop.permute.xlu0 %977 }
 0x74c   : > { %v976_v3 = vpop.permute.xlu1 %975  ;;  %v984_v7 = vsel %vm664_vm2, %v978_v2, 1065369472  ;;  %v982_v9 = vsel %vm664_vm2, 1065369472, %v978_v2 }
 0x74d   : > { %v980_v4 = vsel %vm664_vm2, 1065369472, %v976_v3  ;;  %v983_v5 = vsel %vm664_vm2, %v976_v3, 1065369472  ;;  %v991_v8 = vsel %vm672_vm3, %v984_v7, 0 }
 0x74e   : > { %v989_v6 = vsel %vm672_vm3, %v983_v5, 0  ;;  %2084 = vmatprep.subr.msk.bf16.mxu0 %vm672_vm3, %v983_v5  ;;  %2005 = vmatprep.mubr.msk.bf16.mxu0 %vm672_vm3, %v980_v4  ;;  %v2196_v5 = vld [vmem:[#allocation8 + $0x88] sm:$0xff]  }
 0x74f   : > { %2002 = vmatpush3.bf16.xpose.msra.mxu0 %v989_v6  ;;  %v2197_v6 = vld [vmem:[#allocation8 + $0x90] sm:$0xff]  }
 0x750   : > { %2085 = vmatprep.subr.msk.bf16.mxu0 %vm672_vm3, %v984_v7  ;;  %v2198_v7 = vld [vmem:[#allocation8 + $0x98] sm:$0xff]  }
 0x757   : > { %2004 = vmatpush3.bf16.xpose.msra.mxu0 %v991_v8  ;;  %v2199_v8 = vld [vmem:[#allocation8 + $0xa0] sm:$0xff]  }
 0x75e   : > { %2006 = vmatmul.mubr.msk.bf16.vlgmr.msra.gmra.mrb[16].mxu0 %vm672_vm3, %v982_v9  ;;  %v2200_v9 = vld [vmem:[#allocation8 + $0xa8] sm:$0xff]  }
 0x831   : > { %v2007_v10 = vpop.f32.mrb[16].mxu0 }
 0x832   : > { %v1044_v11 = vmul.f32 0.2, %v2007_v10  ;;  %v1027_v12 = vpop.f32.mrb[17].mxu0 }
 0x833   : > { %v1042_v13 = vmul.f32 0.2, %v1027_v12  ;;  %v2008_v14 = vpop.f32.mrb[18].mxu0 }
 0x834   : > { %v1030_v15 = vpop.f32.mrb[19].mxu0  ;;  %v1048_v16 = vmax.f32 %v2007_v10, %v1044_v11  ;;  %v1045_v18 = vmul.f32 0.2, %v2008_v14  ;;  %v2201_v10 = vld [vmem:[#allocation8 + $0xb0] sm:$0xff]   ;;  %v2202_v11 = vld [vmem:[#allocation8 + $0xb8] sm:$0xff]  }
 0x835   : > { %v1046_v17 = vmax.f32 %v1027_v12, %v1042_v13  ;;  %v1043_v19 = vmul.f32 0.2, %v1030_v15  ;;  %v1829_v12 = vld [vmem:[#allocation10 + $0x1] ss:$0 sm:$0xff] }
 0x836   : > { %v1049_v22 = vmax.f32 %v2008_v14, %v1045_v18  ;;  %v1052_v25 = vadd.f32 %v2818_v42, %v1048_v16 }
 0x837   : > { %v1047_v20 = vmax.f32 %v1030_v15, %v1043_v19  ;;  %v1050_v21 = vadd.f32 %v2820_v45, %v1046_v17 }
 0x838   : > { %v1060_v27 = vsel %vm742_vm4, %v1052_v25, -inf  ;;  %v1053_v28 = vadd.f32 %v2829_v59, %v1049_v22 }
 0x839   : > { %v1054_v23 = vsel %vm742_vm4, %v1050_v21, -inf  ;;  %v1051_v24 = vadd.f32 %v2822_v51, %v1047_v20 }
 0x83a   : > { %1055 = vmax.xlane.f32.xlu1 %v1054_v23  ;;  %v1063_v29 = vsel %vm742_vm4, %v1053_v28, -inf }
 0x83b   : > { %v1057_v26 = vsel %vm742_vm4, %v1051_v24, -inf }
 0x83c   : > { %1058 = vmax.xlane.f32.xlu0 %v1057_v26 }
 0x83e   : > { %1061 = vmax.xlane.f32.xlu1 %v1060_v27 }
 0x842   : > { %1064 = vmax.xlane.f32.xlu1 %v1063_v29 }
 0x8c7   : > { %v1056_v30 = vpop.xlane.xlu1 %1055 }
 0x8c8   : > { %v1066_v31 = vsub.f32 %v1050_v21, %v1056_v30 }
 0x8c9   : > { %v1059_v32 = vpop.xlane.xlu0 %1058 }
 0x8ca   : > { %v1070_v33 = vmul.f32 1.442695, %v1066_v31  ;;  %v1067_v34 = vsub.f32 %v1051_v24, %v1059_v32 }
 0x8cb   : > { %v1062_v35 = vpop.xlane.xlu1 %1061 }
 0x8cc   : > { %2227 = vpow2.f32 %v1070_v33  ;;  %v1072_v36 = vmul.f32 1.442695, %v1067_v34  ;;  %v1068_v37 = vsub.f32 %v1052_v25, %v1062_v35 }
 0x8ce   : > { %2229 = vpow2.f32 %v1072_v36  ;;  %v1074_v38 = vmul.f32 1.442695, %v1068_v37 }
 0x8cf   : > { %v1065_v39 = vpop.xlane.xlu1 %1064 }
 0x8d0   : > { %2231 = vpow2.f32 %v1074_v38  ;;  %v1069_v40 = vsub.f32 %v1053_v28, %v1065_v39 }
 0x8d2   : > { %v1076_v41 = vmul.f32 1.442695, %v1069_v40 }
 0x8d4   : > { %2233 = vpow2.f32 %v1076_v41 }
 0x8d6   : > { %v2228_v43 = vpop.eup %2227 }
 0x8d7   : > { %v1078_v44 = vsel %vm742_vm4, %v2228_v43, 0.0 }
 0x8d8   : > { %v2230_v46 = vpop.eup %2229  ;;  %1079 = vadd.xlane.f32.xlu1 %v1078_v44 }
 0x8d9   : > { %v1081_v47 = vsel %vm742_vm4, %v2230_v46, 0.0 }
 0x8da   : > { %v2232_v48 = vpop.eup %2231  ;;  %1082 = vadd.xlane.f32.xlu0 %v1081_v47 }
 0x8db   : > { %v1084_v49 = vsel %vm742_vm4, %v2232_v48, 0.0 }
 0x8dc   : > { %1085 = vadd.xlane.f32.xlu1 %v1084_v49 }
 0x8de   : > { %v2234_v50 = vpop.eup %2233 }
 0x8df   : > { %v1087_v52 = vsel %vm742_vm4, %v2234_v50, 0.0 }
 0x8e0   : > { %1088 = vadd.xlane.f32.xlu0 %v1087_v52 }
 0x965   : > { %v1080_v54 = vpop.xlane.xlu1 %1079 }
 0x966   : > { %2235 = vrcp.f32 %v1080_v54 }
 0x967   : > { %v1083_v55 = vpop.xlane.xlu0 %1082 }
 0x968   : > { %2237 = vrcp.f32 %v1083_v55 }
 0x969   : > { %v1086_v56 = vpop.xlane.xlu1 %1085 }
 0x96a   : > { %2239 = vrcp.f32 %v1086_v56 }
 0x96d   : > { %v1089_v57 = vpop.xlane.xlu0 %1088 }
 0x96e   : > { %2241 = vrcp.f32 %v1089_v57 }
 0x970   : > { %v2236_v58 = vpop.eup %2235 }
 0x971   : > { %v1094_v61 = vmul.f32 %v2236_v58, %v2228_v43 }
 0x972   : > { %v2238_v60 = vpop.eup %2237 }
 0x973   : > { %v1095_v62 = vmul.f32 %v2238_v60, %v2230_v46 }
 0x974   : > { %v2240_v0 = vpop.eup %2239 }
 0x975   : > { %v1098_v63 = vpack.c.bf16 %v1095_v62, %v1094_v61  ;;  %v1096_v2 = vmul.f32 %v2240_v0, %v2232_v48 }
 0x977   : > { %2013 = vmatprep.mubr.msk.bf16.mxu1 %vm742_vm4, %v1098_v63 }
 0x978   : > { %v2242_v1 = vpop.eup %2241 }
 0x979   : > { %v1097_v3 = vmul.f32 %v2242_v1, %v2234_v50 }
 0x97b   : > { %v1099_v4 = vpack.c.bf16 %v1097_v3, %v1096_v2 }
 0x97d   : > { %2014 = vmatmul.mubr.msk.bf16.vlgmr.msra.gmra.mrb[4].mxu1 %vm742_vm4, %v1099_v4 }
 0x97e   : > { %2018 = vmatpush3.bf16.msra.mxu1 %v2195_v53 }
 0x97f   : > { %2019 = vmatprep.subr.bf16.mxu1 %v2196_v5 }
 0x982   : > { %2020 = vmatpush3.bf16.msra.mxu1 %v2196_v5 }
 0x983   : > { %2021 = vmatprep.subr.bf16.mxu1 %v2197_v6 }
 0x986   : > { %2022 = vmatpush3.bf16.msra.mxu1 %v2197_v6 }
 0x987   : > { %2023 = vmatprep.subr.bf16.mxu1 %v2198_v7 }
 0x98a   : > { %2024 = vmatpush3.bf16.msra.mxu1 %v2198_v7 }
 0x98b   : > { %2025 = vmatprep.subr.bf16.mxu1 %v2199_v8 }
 0x98e   : > { %2026 = vmatpush3.bf16.msra.mxu1 %v2199_v8 }
 0x98f   : > { %2027 = vmatprep.subr.bf16.mxu1 %v2200_v9 }
 0x992   : > { %2028 = vmatpush3.bf16.msra.mxu1 %v2200_v9 }
 0x993   : > { %2029 = vmatprep.subr.bf16.mxu1 %v2201_v10 }
 0x996   : > { %2030 = vmatpush3.bf16.msra.mxu1 %v2201_v10 }
 0x997   : > { %2031 = vmatprep.subr.bf16.mxu1 %v2202_v11 }
 0x99a   : > { %2032 = vmatpush3.bf16.msra.mxu1 %v2202_v11 }
 0xa50   : > { %v2015_v13 = vpop.f32.mrb[4].mxu1 }
 0xa51   : > { %v1157_v14 = vadd.f32 %v2015_v13, %v1829_v12  ;;  %v1148_v15 = vpop.f32.mrb[5].mxu1 }
 0xa52   : > { %v1149_v16 = vadd.f32 %v1829_v12, %v1148_v15  ;;  %v2016_v17 = vpop.f32.mrb[6].mxu1 }
 0xa53   : > { %v1160_v18 = vadd.f32 %v2016_v17, %v1829_v12  ;;  %v1151_v19 = vpop.f32.mrb[7].mxu1  ;;  %v1165_v21 = vmax.f32 %v1157_v14, 0.0 }
 0xa54   : > { %v1152_v20 = vadd.f32 %v1829_v12, %v1151_v19  ;;  %v1163_v23 = vmax.f32 %v1149_v16, 0.0 }
 0xa55   : > { %v1166_v22 = vmax.f32 %v1160_v18, 0.0 }
 0xa56   : > { %v1164_v24 = vmax.f32 %v1152_v20, 0.0 }
 0xa57   : > { %v1168_v25 = vpack.c.bf16 %v1166_v22, %v1165_v21 }
 0xa58   : > { %v1167_v26 = vpack.c.bf16 %v1164_v24, %v1163_v23 }
 0xa5a   : > { %2033 = vmatprep.mubr.bf16.mxu1 %v1167_v26 }
 0xa5b   : > { %2034 = vmatmul.mubr.bf16.vlgmr.msra.gmra.mrb[8].mxu1 %v1168_v25 }
 0xb2e   : > { %v2035_v27 = vpop.f32.mrb[8].mxu1 }
 0xb2f   : > { %v1268_v28 = vpop.f32.mrb[9].mxu1 }
 0xb30   : > { %v2036_v29 = vpop.f32.mrb[10].mxu1 }
 0xb31   : > { %v1284_v30 = vpack.c.bf16 %v2036_v29, %v2035_v27  ;;  %v1271_v31 = vpop.f32.mrb[11].mxu1 }
 0xb32   : > { %v1283_v32 = vpack.c.bf16 %v1271_v31, %v1268_v28  ;;  %v2493_v31 = vmov 0.0  }
 0xb33   : > { %1289 = vrot.lane.b32.xlu0 %v1284_v30, %s2492_s1  ;;  %2061 = vmatprep.subr.bf16.mxu1 %v2493_v31 }
 0xb34   : > { %1287 = vrot.lane.b32.xlu1 %v1283_v32, %s2492_s1  ;;  %2077 = vmatprep.mubr.msk.bf16.mxu1 %vm2494_vm5, %v2493_v31  ;;  %s1798_s1 = sshll.u32 %s2770_s11, 2 }
 0xb35   : > { %s443_s14 = scalar_lea.vmem [#allocation11], %s1798_s1 }
 0xb36   : > { %s1648_s24 = sshll.u32 %s443_s14, 4  ;;  %s2928_s24 = int_to_ptr.vmem [resolvable:$true] %s1648_s24 }
 0xb37   : > { %p2410_p9 = scmp.lt.s32.totalorder %s2928_s24, %s2408_s27 }
 0xba5   : > { %v1290_v33 = vpop.permute.xlu0 %1289 }
 0xba6   : > { %v1288_v34 = vpop.permute.xlu1 %1287  ;;  %v1296_v38 = vsel %vm664_vm2, %v1290_v33, 1065369472  ;;  %v1294_v40 = vsel %vm664_vm2, 1065369472, %v1290_v33  ;;  %v2204_v33 = vld [vmem:[%s2977_s7 + $0x8] sm:$0xff]  }
 0xba7   : > { %v1292_v35 = vsel %vm664_vm2, 1065369472, %v1288_v34  ;;  %v1295_v36 = vsel %vm664_vm2, %v1288_v34, 1065369472  ;;  %v1303_v39 = vsel %vm672_vm3, %v1296_v38, 0  ;;  %v2205_v34 = vld [vmem:[%s2977_s7 + $0x10] sm:$0xff]  }
 0xba8   : > { %v1301_v37 = vsel %vm672_vm3, %v1295_v36, 0  ;;  %2086 = vmatprep.subr.msk.bf16.mxu0 %vm672_vm3, %v1295_v36  ;;  %2041 = vmatprep.mubr.msk.bf16.mxu0 %vm672_vm3, %v1292_v35  ;;  %v2206_v35 = vld [vmem:[%s2977_s7 + $0x18] sm:$0xff]   ;;  %v2207_v36 = vld [vmem:[%s2977_s7 + $0x20] sm:$0xff]  }
 0xba9   : > { %2038 = vmatpush3.bf16.xpose.msra.mxu0 %v1301_v37  ;;  %v2208_v37 = vld [vmem:[%s2977_s7 + $0x28] sm:$0xff]  }
 0xbaa   : > { %2087 = vmatprep.subr.msk.bf16.mxu0 %vm672_vm3, %v1296_v38  ;;  %v2209_v38 = vld [vmem:[%s2977_s7 + $0x30] sm:$0xff]  }
 0xbb1   : > { %2040 = vmatpush3.bf16.xpose.msra.mxu0 %v1303_v39 }
 0xbb2   : > { %2045 = vmatprep.subr.bf16.mxu0 %v1283_v32 }
 0xbb8   : > { %2042 = vmatmul.mubr.msk.bf16.vlgmr.msra.gmra.mrb[20].mxu0 %vm672_vm3, %v1294_v40  ;;  %v1842_v40 = vld [vmem:[#allocation10 + $0x2] ss:$0 sm:$0xff] }
 0xbb9   : > { %2046 = vmatpush3.bf16.msra.mxu0 %v1283_v32  ;;  %v2203_v32 = vld [vmem:[%s2977_s7] sm:$0xff]  }
 0xbba   : > { %2047 = vmatprep.subr.bf16.mxu0 %v1284_v30  ;;  %2062 = vmatpush3.bf16.msra.mxu1 %v2203_v32 }
 0xbbb   : > { %2063 = vmatprep.subr.bf16.mxu1 %v2493_v31 }
 0xbbd   : > { %2048 = vmatpush3.bf16.msra.mxu0 %v1284_v30 }
 0xbbe   : > { %2053 = vmatprep.subr.bf16.mxu0 %v2493_v31  ;;  %2064 = vmatpush3.bf16.msra.mxu1 %v2204_v33 }
 0xbbf   : > { %2065 = vmatprep.subr.bf16.mxu1 %v2493_v31 }
 0xbc2   : > { %2066 = vmatpush3.bf16.msra.mxu1 %v2205_v34 }
 0xbc3   : > { %2067 = vmatprep.subr.bf16.mxu1 %v2493_v31 }
 0xbc6   : > { %2068 = vmatpush3.bf16.msra.mxu1 %v2206_v35 }
 0xbc7   : > { %2069 = vmatprep.subr.bf16.mxu1 %v2493_v31 }
 0xbca   : > { %2070 = vmatpush3.bf16.msra.mxu1 %v2207_v36 }
 0xbcb   : > { %2071 = vmatprep.subr.bf16.mxu1 %v2493_v31 }
 0xbce   : > { %2072 = vmatpush3.bf16.msra.mxu1 %v2208_v37 }
 0xbcf   : > { %2073 = vmatprep.subr.bf16.mxu1 %v2493_v31 }
 0xbd2   : > { %2074 = vmatpush3.bf16.msra.mxu1 %v2209_v38 }
 0xbd3   : > { %2075 = vmatprep.subr.bf16.mxu1 %v2493_v31 }
 0xc8b   : > { %v2043_v41 = vpop.f32.mrb[20].mxu0 }
 0xc8c   : > { %v1356_v43 = vmul.f32 0.2, %v2043_v41  ;;  %v1339_v44 = vpop.f32.mrb[21].mxu0 }
 0xc8d   : > { %v1354_v46 = vmul.f32 0.2, %v1339_v44  ;;  %v2044_v47 = vpop.f32.mrb[22].mxu0 }
 0xc8e   : > { %v1357_v48 = vmul.f32 0.2, %v2044_v47  ;;  %v1342_v49 = vpop.f32.mrb[23].mxu0  ;;  %v1360_v50 = vmax.f32 %v2043_v41, %v1356_v43 }
 0xc8f   : > { %v1358_v52 = vmax.f32 %v1339_v44, %v1354_v46  ;;  %v1355_v53 = vmul.f32 0.2, %v1342_v49 }
 0xc90   : > { %v1361_v54 = vmax.f32 %v2044_v47, %v1357_v48  ;;  %v1364_v60 = vadd.f32 %v2818_v42, %v1360_v50 }
 0xc91   : > { %v1359_v55 = vmax.f32 %v1342_v49, %v1355_v53  ;;  %v1362_v56 = vadd.f32 %v2820_v45, %v1358_v52  ;;  %v1475_v53 = vld [vmem:[%s2782_s18] sm:$0x3]  ;;  %s1856_s18 = sshll.u32 %s2567_s13, 6  ;;  %s2403_s13 = scalar_lea.vmem %s2928_s24, 64 }
 0xc92   : > { %v1365_v62 = vadd.f32 %v2829_v59, %v1361_v54  ;;  %v1372_v63 = vsel %vm742_vm4, %v1364_v60, -inf  ;;  %v2210_v54 = vld [vmem:[%s2977_s7 + $0x38] sm:$0xff]   ;;  %s2926_s5 = scalar_lea.hbm %s2979_s9, %s1856_s18  ;;  %p2404_p7 = scmp.ne.s32.totalorder %s2928_s24, %s2403_s13 }
 0xc93   : > { %v1366_v57 = vsel %vm742_vm4, %v1362_v56, -inf  ;;  %v1363_v58 = vadd.f32 %v2822_v51, %v1359_v55  ;;  %2076 = vmatpush3.bf16.msra.mxu1 %v2210_v54  ;;  %p2411_p1 = scmp.lt.s32.totalorder %s2409_s25, %s2403_s13 }
 0xc94   : > { %1367 = vmax.xlane.f32.xlu1 %v1366_v57  ;;  %v1375_v0 = vsel %vm742_vm4, %v1365_v62, -inf  ;;  %p2405_p13 = pnand %p2404_p7, %p3016_p10 }
 0xc95   : > { %v1369_v61 = vsel %vm742_vm4, %v1363_v58, -inf  ;;  %p2412_p2 = por %p2411_p1, %p2410_p9 }
 0xc96   : > { %1370 = vmax.xlane.f32.xlu0 %v1369_v61  ;;  %v1846_v61 = vld [vmem:[%s2978_s8] ss:$0 sm:$0xff]  ;;  %p2406_p5 = pneg %p2405_p13 }
 0xc98   : > { %1373 = vmax.xlane.f32.xlu1 %v1372_v63  ;;  %p2413_p12 = pnand %p2412_p2, %p2406_p5 }
 0xc9a   : > { %1376 = vmax.xlane.f32.xlu0 %v1375_v0 }
 0xd21   : > { %v1368_v1 = vpop.xlane.xlu1 %1367 }
 0xd22   : > { %v1378_v45 = vsub.f32 %v1362_v56, %v1368_v1 }
 0xd23   : > { %v1371_v2 = vpop.xlane.xlu0 %1370 }
 0xd24   : > { %v1382_v3 = vmul.f32 1.442695, %v1378_v45  ;;  %v1379_v4 = vsub.f32 %v1363_v58, %v1371_v2 }
 0xd25   : > { %v1374_v51 = vpop.xlane.xlu1 %1373 }
 0xd26   : > { %2243 = vpow2.f32 %v1382_v3  ;;  %v1384_v42 = vmul.f32 1.442695, %v1379_v4  ;;  %v1380_v5 = vsub.f32 %v1364_v60, %v1374_v51 }
 0xd27   : > { %v1377_v6 = vpop.xlane.xlu0 %1376 }
 0xd28   : > { %2245 = vpow2.f32 %v1384_v42  ;;  %v1386_v7 = vmul.f32 1.442695, %v1380_v5  ;;  %v1381_v59 = vsub.f32 %v1365_v62, %v1377_v6 }
 0xd2a   : > { %2247 = vpow2.f32 %v1386_v7  ;;  %v1388_v8 = vmul.f32 1.442695, %v1381_v59 }
 0xd2c   : > { %2249 = vpow2.f32 %v1388_v8 }
 0xd30   : > { %v2244_v9 = vpop.eup %2243 }
 0xd31   : > { %v1390_v10 = vsel %vm742_vm4, %v2244_v9, 0.0 }
 0xd32   : > { %v2246_v11 = vpop.eup %2245  ;;  %1391 = vadd.xlane.f32.xlu1 %v1390_v10 }
 0xd33   : > { %v1393_v12 = vsel %vm742_vm4, %v2246_v11, 0.0 }
 0xd34   : > { %v2248_v13 = vpop.eup %2247  ;;  %1394 = vadd.xlane.f32.xlu0 %v1393_v12 }
 0xd35   : > { %v1396_v14 = vsel %vm742_vm4, %v2248_v13, 0.0 }
 0xd36   : > { %v2250_v15 = vpop.eup %2249  ;;  %1397 = vadd.xlane.f32.xlu1 %v1396_v14 }
 0xd37   : > { %v1399_v16 = vsel %vm742_vm4, %v2250_v15, 0.0 }
 0xd38   : > { %1400 = vadd.xlane.f32.xlu0 %v1399_v16 }
 0xdbf   : > { %v1392_v17 = vpop.xlane.xlu1 %1391 }
 0xdc0   : > { %2251 = vrcp.f32 %v1392_v17 }
 0xdc1   : > { %v1395_v18 = vpop.xlane.xlu0 %1394 }
 0xdc2   : > { %2253 = vrcp.f32 %v1395_v18 }
 0xdc3   : > { %v1398_v19 = vpop.xlane.xlu1 %1397 }
 0xdc4   : > { %2255 = vrcp.f32 %v1398_v19 }
 0xdc5   : > { %v1401_v20 = vpop.xlane.xlu0 %1400 }
 0xdc6   : > { %2257 = vrcp.f32 %v1401_v20 }
 0xdca   : > { %v2252_v21 = vpop.eup %2251 }
 0xdcb   : > { %v1406_v23 = vmul.f32 %v2252_v21, %v2244_v9 }
 0xdcc   : > { %v2254_v22 = vpop.eup %2253 }
 0xdcd   : > { %v1407_v24 = vmul.f32 %v2254_v22, %v2246_v11 }
 0xdce   : > { %v2256_v25 = vpop.eup %2255 }
 0xdcf   : > { %v1410_v26 = vpack.c.bf16 %v1407_v24, %v1406_v23  ;;  %v1408_v28 = vmul.f32 %v2256_v25, %v2248_v13 }
 0xdd0   : > { %v2258_v27 = vpop.eup %2257 }
 0xdd1   : > { %v1409_v29 = vmul.f32 %v2258_v27, %v2250_v15  ;;  %2049 = vmatprep.mubr.msk.bf16.mxu0 %vm742_vm4, %v1410_v26 }
 0xdd3   : > { %v1411_v30 = vpack.c.bf16 %v1409_v29, %v1408_v28 }
 0xdd5   : > { %2050 = vmatmul.mubr.msk.bf16.vlgmr.msra.gmra.mrb[24].mxu0 %vm742_vm4, %v1411_v30 }
 0xdd6   : > { %2057 = vmatprep.mubr.msk.bf16.mxu0 %vm2494_vm5, %v2493_v31 }
 0xea8   : > { %v2051_v39 = vpop.f32.mrb[24].mxu0 }
 0xea9   : > { %v1460_v41 = vpop.f32.mrb[25].mxu0  ;;  %v1469_v44 = vadd.f32 %v2051_v39, %v1842_v40 }
 0xeaa   : > { %v2052_v43 = vpop.f32.mrb[26].mxu0  ;;  %v1461_v48 = vadd.f32 %v1842_v40, %v1460_v41 }
 0xeab   : > { %v1472_v46 = vadd.f32 %v2052_v43, %v1842_v40  ;;  %v1463_v47 = vpop.f32.mrb[27].mxu0 }
 0xeac   : > { %v1464_v49 = vadd.f32 %v1842_v40, %v1463_v47 }
 0xead   : > { %v1477_v50 = vpack.c.bf16 %v1472_v46, %v1469_v44 }
 0xeae   : > { %v1476_v52 = vpack.c.bf16 %v1464_v49, %v1461_v48 }
 0xeb0   : > { %2054 = vmatpush3.bf16.msra.mxu0 %v1476_v52 }
 0xeb1   : > { %2055 = vmatprep.subr.bf16.mxu0 %v2493_v31 }
 0xeb4   : > { %2056 = vmatpush3.bf16.msra.mxu0 %v1477_v50 }
 0xeb7   : > { %2058 = vmatmul.mubr.msk.bf16.vlgmr.msra.gmra.mrb[28].mxu0 %vm742_vm4, %v1475_v53 }
 0xf8a   : > { %v1515_v55 = vpop.f32.mrb[28].mxu0 }
 0xf8b   : > { %v1521_v56 = vpack.c.bf16 %v1515_v55, %v1515_v55  ;;  %v2059_v57 = vpop.f32.mrb[29].mxu0 }
 0xf8c   : > { %v1518_v58 = vpop.f32.mrb[30].mxu0 }
 0xf8d   : > { %v2060_v60 = vpop.f32.mrb[31].mxu0  ;;  %2078 = vmatmul.mubr.bf16.vlgmr.msra.gmra.mrb[12].mxu1 %v1521_v56 }
0x1060   : > { %v1627_v62 = vpop.f32.mrb[12].mxu1 }
0x1061   : > { %v1628_v63 = vadd.f32 %v1846_v61, %v1627_v62  ;;  %v2079_v0 = vpop.f32.mrb[13].mxu1 }
0x1062   : > { %v1630_v1 = vpop.f32.mrb[14].mxu1 }
0x1063   : > { %1633 = vst [vmem:[%s443_s14] sm:$0xf] %v1628_v63  ;;  %v2080_v45 = vpop.f32.mrb[15].mxu1 }
0x1064   : > { %2416 = shalt.err (!%p2413_p12)
}
0x1065   : > { %s2417_s11 = scalar_lea.hbm %s2926_s5, 64  ;;  %s2421_s3 = scalar_lea.hbm %s2979_s9, 128 }
0x1066   : > { %p2418_p6 = scmp.ne.s32.totalorder %s2926_s5, %s2417_s11  ;;  %p2422_p4 = scmp.lt.u32.totalorder %s2926_s5, %s2979_s9 }
0x1067   : > { %p2423_p8 = scmp.lt.u32.totalorder %s2421_s3, %s2417_s11  ;;  %p2425_p7 = scmp.lt.u32.totalorder %s2417_s11, %s2926_s5 }
0x1068   : > { %p2419_p11 = pnand %p2418_p6, %p3016_p10 }
0x1069   : > { %p2424_p3 = por %p2423_p8, %p2422_p4 }
0x106a   : > { %p2420_p0 = pneg %p2419_p11 }
0x106b   : > { %p2426_p13 = por %p2425_p7, %p2424_p3 }
0x106d   : > { %p2427_p5 = pnand %p2426_p13, %p2420_p0 }
0x106f   : > { %2430 = shalt.err (!%p2427_p5)
}
0x1070   : > { %2104 = dma.vmem_to_hbm [thread:$0]  (%p3016_p10), %s2928_s24, 64, %s2926_s5, %s1635_s17  }
0x1071 PF: > { %s3017_s1 = sld [smem:[#allocation18_spill]]  ;;  %s1660_s6 = sand.u32 1, %s2469_s30  }
0x1072   : > { %p3019_p1 = scmp.ge.s32.totalorder %s2481_s12, 2  ;;  %s1661_s21 = scalar_lea.sflag [#allocation4], %s1660_s6 }
0x1077   : > { %p3018_p9 = scmp.ne.s32.totalorder %s3017_s1, 0 }
0x1079   : > { %p2124_p2 = pnand %p3019_p1, %p3018_p9 }
0x107b   : > { %2464 = dma.done.wait (!%p2124_p2), %s1661_s21, 64  }
0x107c   : > { %2466 = vsyncadd (!%p2124_p2), %s1661_s21, 4294967232  ;;  %s3020_s18 = sld [smem:[#allocation17_spill]]  ;;  %s3021_s11 = sld [smem:[#allocation19_spill]] }
0x107d   : > { %p26_p12 = scmp.ge.s32.totalorder %s2673_s29, 4   ;;  %s3022_s30 = smov %s2473_s10 }
0x107e   : > { %s3024_s12 = smov %s2673_s29 }
0x107f   :  { %28 = sbr.rel (!%p26_p12) target bundleno = 13 (0xd), region = 133 }
0x1082   : > { %s3023_s10 = smov %s3020_s18 }
0x1086   :  { %1666 = vsyncpa [#allocation3], 1 }
0x1087   :  { %1668 = vsyncpa [#allocation3 + $0x1], 1 }
0x1088   :  { %1669 = vsyncpa [#allocation6], 1 }
0x1089   :  { %1671 = vsyncpa [#allocation6 + $0x1], 1 }
0x108a   :  { %1672 = vsyncpa [#allocation9], 1 }
0x108b   :  { %1673 = vsyncpa [#allocation4], 1 }
0x108c   :  { %1675 = vsyncpa [#allocation4 + $0x1], 1 }

</bundles_post_ra>
